<compile_context>
chip_gen: v6e
topology: v6e:2x2x1
jax: 0.10.0
libtpu: 0.0.40
codegen_flags: <defaults>
</compile_context>

<pallas_src>
from math import sqrt

import jax
import jax.numpy as jnp
from jax.experimental import pallas as pl
from jax.experimental.pallas import tpu as pltpu


def make_attention_kernel(Bt, L, S, D, H, d_k, d_v, C, mxu_dtype, with_attn):
    """One grid step == one batch tile (Bt batch rows, all H heads)."""
    M = Bt * L          # rows per head in the projection matmuls
    n = H * Bt          # merged (head, batch-row) axis for attention matmuls (h-major)

    def kernel(x_ref, wqkv_ref, bqkv_ref, wo_ref, bo_ref, out_ref, *attn_refs):
        f32 = jnp.float32
        x2 = x_ref[...].reshape(M, D)                       # merge (Bt, L) -> M rows (L % 8 == 0)
        # Leading-axis broadcast: heads share the activations, weights stay
        # single-copy (no Bt-fold weight replication).
        xh = jnp.broadcast_to(x2[None], (H, M, D))

        # --- fused Q|K|V projection: H batched matmuls with M = Bt*L rows ----
        # (1/sqrt(d_k) and the Q bias were pre-scaled into the weight slab.)
        qkv = jnp.einsum(
            "hmd,hcd->hmc",
            xh.astype(mxu_dtype), wqkv_ref[...].astype(mxu_dtype),
            preferred_element_type=f32) + bqkv_ref[...]     # (H, M, C)

        qkv = qkv.reshape(n, L, C)                          # (H*Bt, L, C), h-major
        q = qkv[..., :d_k]                                  # (n, L, d_k), pre-scaled
        k = qkv[..., d_k:2 * d_k]                           # (n, S, d_k)   (S == L)
        v = qkv[..., 2 * d_k:]                              # (n, S, d_v)

        # --- scores + numerically stable softmax (f32 VPU/EUP math) ----------
        s = jnp.einsum("nle,nse->nls",
                       q.astype(mxu_dtype), k.astype(mxu_dtype),
                       preferred_element_type=f32)          # (n, L, S)
        m = jnp.max(s, axis=-1, keepdims=True)
        p = jnp.exp(s - m)
        denom = jnp.sum(p, axis=-1, keepdims=True)

        if with_attn:
            a = p / denom                                   # exact: attn is user-visible
            a4 = a.reshape(H, Bt, L, S)                     # leading-only reshape (free)
            attn_ref = attn_refs[0]
            # Per-head static stores into the (Bt, H, L, S) block avoid a
            # leading-dim transpose relayout inside the kernel.
            for h in range(H):
                attn_ref[:, h, :, :] = a4[h].astype(attn_ref.dtype)
        else:
            a = p * pl.reciprocal(denom, approx=True)       # EUP vrcp slot (internal only)

        # --- attention-weighted values + output projection --------------------
        o = jnp.einsum("nls,nsv->nlv",
                       a.astype(mxu_dtype), v.astype(mxu_dtype),
                       preferred_element_type=f32)          # (n, L, d_v)
        y = jnp.einsum("hmv,hvd->hmd",
                       o.reshape(H, M, d_v).astype(mxu_dtype),
                       wo_ref[...].astype(mxu_dtype),
                       preferred_element_type=f32)          # (H, M, D)
        out = jnp.sum(y, axis=0) + bo_ref[...]              # head sum: one VPU reduce
        out_ref[...] = out.reshape(Bt, L, D).astype(out_ref.dtype)

    return kernel


def attention_layer_forward(x, params, n_heads, *, batch_tile=None,
                            mxu_dtype=jnp.bfloat16, attn_dtype=jnp.float32,
                            return_attn=True):
    """x: (B, L, D) float32. params: projection weights/biases in (in, out) layout."""
    B, L, D = x.shape
    H = n_heads
    d_k = params["wq"].shape[1] // H
    d_v = params["wv"].shape[1] // H
    S = L                       # self-attention (first=False)
    C = 2 * d_k + d_v
    scale = 1.0 / sqrt(d_k)

    if batch_tile is None:
        # nb >= 2 grid steps: enables DMA/compute overlap and lets the
        # "parallel" axis shard across both v7x TensorCores.
        batch_tile = B // 2 if (B % 2 == 0 and B >= 2) else B
    Bt = batch_tile
    if B % Bt != 0:
        raise ValueError(f"batch {B} not divisible by batch_tile {Bt}")
    nb = B // Bt

    # ---- wrapper-side (XLA) weight repacking ---------------------------------
    # Per-head, output-major (C, D) slabs; 1/sqrt(d_k) folded into W_q / b_q.
    w_qkv = jnp.concatenate(
        [(params["wq"] * scale).T.reshape(H, d_k, D),
         params["wk"].T.reshape(H, d_k, D),
         params["wv"].T.reshape(H, d_v, D)], axis=1)                  # (H, C, D)
    b_qkv = jnp.concatenate(
        [(params["bq"] * scale).reshape(H, d_k),
         params["bk"].reshape(H, d_k),
         params["bv"].reshape(H, d_v)], axis=1).reshape(H, 1, C)      # (H, 1, C)
    wo_h = params["wo"].reshape(H, d_v, D)                            # (H, d_v, D)
    bo = params["bo"].reshape(1, D)                                   # (1, D)

    kernel = make_attention_kernel(Bt, L, S, D, H, d_k, d_v, C, mxu_dtype,
                                   return_attn)

    # ---- VMEM budget (stay under v7x's 64 MiB / TC) + cost estimate ----------
    f32b = 4
    mxub = jnp.dtype(mxu_dtype).itemsize
    attnb = jnp.dtype(attn_dtype).itemsize
    M = Bt * L
    n = H * Bt
    block_bytes = (2 * Bt * L * D * f32b
                   + (Bt * H * L * S * attnb if return_attn else 0))
    weight_bytes = (H * C * D + H * C + H * d_v * D + D) * f32b
    tmp_bytes = ((H * M * D + H * M * C + 3 * n * L * S + n * L * d_v
                  + H * M * D + M * D) * f32b
                 + (H * M * (D + C) + n * L * (2 * d_k + d_v + S)
                    + H * M * d_v) * mxub)
    vmem_needed = 2 * block_bytes + 2 * weight_bytes + tmp_bytes + (1 << 20)

    hard_cap = 48 << 20                       # below v7x's 64 MiB per TensorCore
    try:
        hard_cap = min(hard_cap,
                       (pltpu.get_tpu_info().vmem_capacity_bytes * 3) // 4)
    except Exception:
        pass
    # If vmem_needed exceeds hard_cap at realistic dims, shrink batch_tile.
    vmem_limit = int(min(hard_cap, max(16 << 20, vmem_needed)))

    cost = pl.CostEstimate(
        flops=int(2 * B * H * L * D * C            # fused QKV projection
                  + 2 * B * H * L * S * d_k        # scores
                  + 2 * B * H * L * S * d_v        # A @ V
                  + 2 * B * H * L * d_v * D),      # output projection
        transcendentals=int(B * H * L * S),        # exp
        bytes_accessed=int((x.size + w_qkv.size + b_qkv.size + wo_h.size
                            + bo.size + B * L * D) * f32b
                           + (B * H * L * S * attnb if return_attn else 0)))

    out_shapes = [jax.ShapeDtypeStruct((B, L, D), x.dtype)]
    out_specs = [pl.BlockSpec((Bt, L, D), lambda i: (i, 0, 0))]
    if return_attn:
        # TODO(synk): at realistic L, tile this output over a query-block grid
        # axis (or emit bf16 / drop it) — attn dominates HBM writeback.
        out_shapes.append(jax.ShapeDtypeStruct((B, H, L, S), attn_dtype))
        out_specs.append(pl.BlockSpec((Bt, H, L, S), lambda i: (i, 0, 0, 0)))

    def build(single_buffer_weights):
        def wspec(shape):
            nd = len(shape)

            def imap(i):
                return (0,) * nd

            if single_buffer_weights:
                # Constant index_map -> one resident VMEM copy is enough.
                return pl.BlockSpec(shape, imap, pipeline_mode=pl.Buffered(1))
            return pl.BlockSpec(shape, imap)

        return pl.pallas_call(
            kernel,
            out_shape=tuple(out_shapes),
            grid_spec=pltpu.PrefetchScalarGridSpec(
                num_scalar_prefetch=0,
                grid=(nb,),
                in_specs=[
                    pl.BlockSpec((Bt, L, D), lambda i: (i, 0, 0)),    # x (batch tiled)
                    wspec((H, C, D)),                                  # fused W_qkv
                    wspec((H, 1, C)),                                  # fused b_qkv
                    wspec((H, d_v, D)),                                # W_o per head
                    wspec((1, D)),                                     # b_o
                ],
                out_specs=tuple(out_specs),
            ),
            compiler_params=pltpu.CompilerParams(
                dimension_semantics=("parallel",),
                vmem_limit_bytes=vmem_limit),
            cost_estimate=cost,
        )

    try:
        results = build(True)(x, w_qkv, b_qkv, wo_h, bo)
    except Exception:
        # pipeline_mode=pl.Buffered(1) unsupported in this JAX build: fall back
        # to default double-buffered weight specs (same numerics, more VMEM).
        results = build(False)(x, w_qkv, b_qkv, wo_h, bo)

    if return_attn:
        out, attn = results
    else:
        (out,) = results
        attn = None
    return out, attn


def reference_forward(x, params, n_heads):
    """Pure-JAX reference matching the PyTorch module semantics."""
    B, L, D = x.shape
    H = n_heads
    q = x @ params["wq"] + params["bq"][0]
    k = x @ params["wk"] + params["bk"][0]
    v = x @ params["wv"] + params["bv"][0]
    d_k = q.shape[-1] // H
    d_v = v.shape[-1] // H
    q = q.reshape(B, L, H, d_k)
    k = k.reshape(B, L, H, d_k)
    v = v.reshape(B, L, H, d_v)
    s = jnp.einsum("blhe,bshe->bhls", q, k) / sqrt(d_k)
    a = jax.nn.softmax(s, axis=-1)
    o = jnp.einsum("bhls,bshd->blhd", a, v).reshape(B, L, H * d_v)
    out = o @ params["wo"] + params["bo"][0]
    return out, a


if __name__ == "__main__":
    B, L, d_model, n_heads = 2, 8, 32, 8
    d_k = d_model // n_heads
    d_v = d_model // n_heads

    key = jax.random.PRNGKey(0)
    ks = jax.random.split(key, 10)

    # Deterministic parameter init (weights stored as (in, out) for x @ W).
    params = {
        "wq": jax.random.normal(ks[0], (d_model, n_heads * d_k), jnp.float32) * 0.1,
        "bq": jax.random.normal(ks[1], (1, n_heads * d_k), jnp.float32) * 0.1,
        "wk": jax.random.normal(ks[2], (d_model, n_heads * d_k), jnp.float32) * 0.1,
        "bk": jax.random.normal(ks[3], (1, n_heads * d_k), jnp.float32) * 0.1,
        "wv": jax.random.normal(ks[4], (d_model, n_heads * d_v), jnp.float32) * 0.1,
        "bv": jax.random.normal(ks[5], (1, n_heads * d_v), jnp.float32) * 0.1,
        "wo": jax.random.normal(ks[6], (n_heads * d_v, d_model), jnp.float32) * 0.1,
        "bo": jax.random.normal(ks[7], (1, d_model), jnp.float32) * 0.1,
    }
    x = jax.random.normal(ks[8], (B, L, d_model), jnp.float32)

    ref_out, ref_attn = reference_forward(x, params, n_heads)

    # Default config: bf16 MXU operands, f32 accumulation / softmax.
    out, attn = attention_layer_forward(x, params, n_heads)
    out, attn = jax.block_until_ready(out), jax.block_until_ready(attn)
    assert jnp.allclose(out, ref_out, atol=3e-2, rtol=3e-2), "output mismatch (bf16 MXU)"
    assert jnp.allclose(attn, ref_attn, atol=3e-2, rtol=3e-2), "attn mismatch (bf16 MXU)"

    # f32 MXU path reproduces the PyTorch-module numerics tightly.
    out32, attn32 = attention_layer_forward(x, params, n_heads,
                                            mxu_dtype=jnp.float32)
    out32, attn32 = jax.block_until_ready(out32), jax.block_until_ready(attn32)
    assert jnp.allclose(out32, ref_out, atol=1e-4, rtol=1e-4), "output mismatch (f32 MXU)"
    assert jnp.allclose(attn32, ref_attn, atol=1e-4, rtol=1e-4), "attn mismatch (f32 MXU)"

    # attn-free fast path (approx-reciprocal softmax normalization, no attn store).
    out_na, attn_na = attention_layer_forward(x, params, n_heads, return_attn=False)
    out_na = jax.block_until_ready(out_na)
    assert attn_na is None
    assert jnp.allclose(out_na, ref_out, atol=3e-2, rtol=3e-2), "output mismatch (no attn)"

    print("KERNEL_OK")
</pallas_src>

<mosaic_0001>
module attributes {stable_mosaic.version = 11 : i64} {
  func.func @kernel(%arg0: i32, %arg1: memref<1x8x32xf32, #tpu.memory_space<vmem>>, %arg2: memref<8x12x32xf32, #tpu.memory_space<vmem>>, %arg3: memref<8x1x12xf32, #tpu.memory_space<vmem>>, %arg4: memref<8x4x32xf32, #tpu.memory_space<vmem>>, %arg5: memref<1x32xf32, #tpu.memory_space<vmem>>, %arg6: memref<1x8x32xf32, #tpu.memory_space<vmem>>, %arg7: memref<1x8x8x8xf32, #tpu.memory_space<vmem>>) attributes {dimension_semantics = [#tpu.dimension_semantics<parallel>], iteration_bounds = array<i64: 2>, scalar_prefetch = 0 : i64, scratch_operands = 0 : i64, tpu.core_type = #tpu.core_type<tc>, window_params = [{transform_indices = @transform_0, window_bounds = array<i64: 1, 8, 32>}, {pipeline_mode = #tpu.pipeline_mode<synchronous>, transform_indices = @transform_1, window_bounds = array<i64: 8, 12, 32>}, {pipeline_mode = #tpu.pipeline_mode<synchronous>, transform_indices = @transform_2, window_bounds = array<i64: 8, 1, 12>}, {pipeline_mode = #tpu.pipeline_mode<synchronous>, transform_indices = @transform_3, window_bounds = array<i64: 8, 4, 32>}, {pipeline_mode = #tpu.pipeline_mode<synchronous>, transform_indices = @transform_4, window_bounds = array<i64: 1, 32>}, {transform_indices = @transform_5, window_bounds = array<i64: 1, 8, 32>}, {transform_indices = @transform_6, window_bounds = array<i64: 1, 8, 8, 8>}]} {
    %c0 = arith.constant 0 : index
    %c0_0 = arith.constant 0 : index
    %c0_1 = arith.constant 0 : index
    %0 = vector.load %arg1[%c0, %c0_0, %c0_1] : memref<1x8x32xf32, #tpu.memory_space<vmem>>, vector<1x8x32xf32>
    %1 = vector.shape_cast %0 : vector<1x8x32xf32> to vector<8x32xf32>
    %2 = vector.shape_cast %1 : vector<8x32xf32> to vector<1x8x32xf32>
    %3 = vector.shape_cast %2 : vector<1x8x32xf32> to vector<1x8x32xf32>
    %4 = vector.broadcast %3 : vector<1x8x32xf32> to vector<8x8x32xf32>
    %5 = arith.truncf %4 : vector<8x8x32xf32> to vector<8x8x32xbf16>
    %c0_2 = arith.constant 0 : index
    %c0_3 = arith.constant 0 : index
    %c0_4 = arith.constant 0 : index
    %6 = vector.load %arg2[%c0_2, %c0_3, %c0_4] : memref<8x12x32xf32, #tpu.memory_space<vmem>>, vector<8x12x32xf32>
    %7 = arith.truncf %6 : vector<8x12x32xf32> to vector<8x12x32xbf16>
    "tpu.trace_start"() <{level = 10 : i32, message = "hmd,hcd->hmc"}> : () -> ()
    %cst = arith.constant dense<0.000000e+00> : vector<8x8x12xf32>
    %8 = tpu.matmul %5, %7, %cst {dimension_numbers = #tpu.dot_dimension_numbers<[2], [2], [1], [1], [0, 0, 0, 1, 1, 1], [0], [0]>} : vector<8x8x32xbf16>, vector<8x12x32xbf16>, vector<8x8x12xf32> -> vector<8x8x12xf32>
    "tpu.trace_stop"() : () -> ()
    %c0_5 = arith.constant 0 : index
    %c0_6 = arith.constant 0 : index
    %c0_7 = arith.constant 0 : index
    %9 = vector.load %arg3[%c0_5, %c0_6, %c0_7] : memref<8x1x12xf32, #tpu.memory_space<vmem>>, vector<8x1x12xf32>
    %10 = vector.broadcast %9 : vector<8x1x12xf32> to vector<8x8x12xf32>
    %11 = arith.addf %8, %10 : vector<8x8x12xf32>
    %12 = vector.extract_strided_slice %11 {offsets = [0, 0, 0], sizes = [8, 8, 4], strides = [1, 1, 1]} : vector<8x8x12xf32> to vector<8x8x4xf32>
    %13 = vector.extract_strided_slice %11 {offsets = [0, 0, 4], sizes = [8, 8, 4], strides = [1, 1, 1]} : vector<8x8x12xf32> to vector<8x8x4xf32>
    %14 = vector.extract_strided_slice %11 {offsets = [0, 0, 8], sizes = [8, 8, 4], strides = [1, 1, 1]} : vector<8x8x12xf32> to vector<8x8x4xf32>
    %15 = arith.truncf %12 : vector<8x8x4xf32> to vector<8x8x4xbf16>
    %16 = arith.truncf %13 : vector<8x8x4xf32> to vector<8x8x4xbf16>
    "tpu.trace_start"() <{level = 10 : i32, message = "nle,nse->nls"}> : () -> ()
    %cst_8 = arith.constant dense<0.000000e+00> : vector<8x8x8xf32>
    %17 = tpu.matmul %15, %16, %cst_8 {dimension_numbers = #tpu.dot_dimension_numbers<[2], [2], [1], [1], [0, 0, 0, 1, 1, 1], [0], [0]>} : vector<8x8x4xbf16>, vector<8x8x4xbf16>, vector<8x8x8xf32> -> vector<8x8x8xf32>
    "tpu.trace_stop"() : () -> ()
    %cst_9 = arith.constant dense<0xFF800000> : vector<8x8xf32>
    %18 = vector.multi_reduction <maximumf>, %17, %cst_9 [2] : vector<8x8x8xf32> to vector<8x8xf32>
    %19 = vector.shape_cast %18 : vector<8x8xf32> to vector<8x8x1xf32>
    %20 = vector.broadcast %19 : vector<8x8x1xf32> to vector<8x8x8xf32>
    %21 = arith.subf %17, %20 : vector<8x8x8xf32>
    %22 = math.exp %21 : vector<8x8x8xf32>
    %cst_10 = arith.constant dense<0.000000e+00> : vector<8x8xf32>
    %23 = vector.multi_reduction <add>, %22, %cst_10 [2] : vector<8x8x8xf32> to vector<8x8xf32>
    %24 = vector.shape_cast %23 : vector<8x8xf32> to vector<8x8x1xf32>
    %25 = vector.broadcast %24 : vector<8x8x1xf32> to vector<8x8x8xf32>
    %26 = arith.divf %22, %25 : vector<8x8x8xf32>
    %27 = vector.shape_cast %26 : vector<8x8x8xf32> to vector<8x1x8x8xf32>
    %28 = vector.extract_strided_slice %27 {offsets = [0, 0, 0, 0], sizes = [1, 1, 8, 8], strides = [1, 1, 1, 1]} : vector<8x1x8x8xf32> to vector<1x1x8x8xf32>
    %29 = vector.shape_cast %28 : vector<1x1x8x8xf32> to vector<1x8x8xf32>
    %c0_11 = arith.constant 0 : index
    %c0_12 = arith.constant 0 : index
    %c0_13 = arith.constant 0 : index
    %c0_14 = arith.constant 0 : index
    %30 = vector.load %arg7[%c0_11, %c0_12, %c0_13, %c0_14] : memref<1x8x8x8xf32, #tpu.memory_space<vmem>>, vector<1x1x8x8xf32>
    %31 = vector.shape_cast %30 : vector<1x1x8x8xf32> to vector<1x8x8xf32>
    %32 = vector.shape_cast %29 : vector<1x8x8xf32> to vector<1x1x8x8xf32>
    tpu.vector_store %arg7[%c0_11, %c0_12, %c0_13, %c0_14], %32 {strides = array<i32>} : memref<1x8x8x8xf32, #tpu.memory_space<vmem>>, vector<1x1x8x8xf32>,
    %33 = vector.extract_strided_slice %27 {offsets = [1, 0, 0, 0], sizes = [1, 1, 8, 8], strides = [1, 1, 1, 1]} : vector<8x1x8x8xf32> to vector<1x1x8x8xf32>
    %34 = vector.shape_cast %33 : vector<1x1x8x8xf32> to vector<1x8x8xf32>
    %c0_15 = arith.constant 0 : index
    %c1 = arith.constant 1 : index
    %c0_16 = arith.constant 0 : index
    %c0_17 = arith.constant 0 : index
    %35 = vector.load %arg7[%c0_15, %c1, %c0_16, %c0_17] : memref<1x8x8x8xf32, #tpu.memory_space<vmem>>, vector<1x1x8x8xf32>
    %36 = vector.shape_cast %35 : vector<1x1x8x8xf32> to vector<1x8x8xf32>
    %37 = vector.shape_cast %34 : vector<1x8x8xf32> to vector<1x1x8x8xf32>
    tpu.vector_store %arg7[%c0_15, %c1, %c0_16, %c0_17], %37 {strides = array<i32>} : memref<1x8x8x8xf32, #tpu.memory_space<vmem>>, vector<1x1x8x8xf32>,
    %38 = vector.extract_strided_slice %27 {offsets = [2, 0, 0, 0], sizes = [1, 1, 8, 8], strides = [1, 1, 1, 1]} : vector<8x1x8x8xf32> to vector<1x1x8x8xf32>
    %39 = vector.shape_cast %38 : vector<1x1x8x8xf32> to vector<1x8x8xf32>
    %c0_18 = arith.constant 0 : index
    %c2 = arith.constant 2 : index
    %c0_19 = arith.constant 0 : index
    %c0_20 = arith.constant 0 : index
    %40 = vector.load %arg7[%c0_18, %c2, %c0_19, %c0_20] : memref<1x8x8x8xf32, #tpu.memory_space<vmem>>, vector<1x1x8x8xf32>
    %41 = vector.shape_cast %40 : vector<1x1x8x8xf32> to vector<1x8x8xf32>
    %42 = vector.shape_cast %39 : vector<1x8x8xf32> to vector<1x1x8x8xf32>
    tpu.vector_store %arg7[%c0_18, %c2, %c0_19, %c0_20], %42 {strides = array<i32>} : memref<1x8x8x8xf32, #tpu.memory_space<vmem>>, vector<1x1x8x8xf32>,
    %43 = vector.extract_strided_slice %27 {offsets = [3, 0, 0, 0], sizes = [1, 1, 8, 8], strides = [1, 1, 1, 1]} : vector<8x1x8x8xf32> to vector<1x1x8x8xf32>
    %44 = vector.shape_cast %43 : vector<1x1x8x8xf32> to vector<1x8x8xf32>
    %c0_21 = arith.constant 0 : index
    %c3 = arith.constant 3 : index
    %c0_22 = arith.constant 0 : index
    %c0_23 = arith.constant 0 : index
    %45 = vector.load %arg7[%c0_21, %c3, %c0_22, %c0_23] : memref<1x8x8x8xf32, #tpu.memory_space<vmem>>, vector<1x1x8x8xf32>
    %46 = vector.shape_cast %45 : vector<1x1x8x8xf32> to vector<1x8x8xf32>
    %47 = vector.shape_cast %44 : vector<1x8x8xf32> to vector<1x1x8x8xf32>
    tpu.vector_store %arg7[%c0_21, %c3, %c0_22, %c0_23], %47 {strides = array<i32>} : memref<1x8x8x8xf32, #tpu.memory_space<vmem>>, vector<1x1x8x8xf32>,
    %48 = vector.extract_strided_slice %27 {offsets = [4, 0, 0, 0], sizes = [1, 1, 8, 8], strides = [1, 1, 1, 1]} : vector<8x1x8x8xf32> to vector<1x1x8x8xf32>
    %49 = vector.shape_cast %48 : vector<1x1x8x8xf32> to vector<1x8x8xf32>
    %c0_24 = arith.constant 0 : index
    %c4 = arith.constant 4 : index
    %c0_25 = arith.constant 0 : index
    %c0_26 = arith.constant 0 : index
    %50 = vector.load %arg7[%c0_24, %c4, %c0_25, %c0_26] : memref<1x8x8x8xf32, #tpu.memory_space<vmem>>, vector<1x1x8x8xf32>
    %51 = vector.shape_cast %50 : vector<1x1x8x8xf32> to vector<1x8x8xf32>
    %52 = vector.shape_cast %49 : vector<1x8x8xf32> to vector<1x1x8x8xf32>
    tpu.vector_store %arg7[%c0_24, %c4, %c0_25, %c0_26], %52 {strides = array<i32>} : memref<1x8x8x8xf32, #tpu.memory_space<vmem>>, vector<1x1x8x8xf32>,
    %53 = vector.extract_strided_slice %27 {offsets = [5, 0, 0, 0], sizes = [1, 1, 8, 8], strides = [1, 1, 1, 1]} : vector<8x1x8x8xf32> to vector<1x1x8x8xf32>
    %54 = vector.shape_cast %53 : vector<1x1x8x8xf32> to vector<1x8x8xf32>
    %c0_27 = arith.constant 0 : index
    %c5 = arith.constant 5 : index
    %c0_28 = arith.constant 0 : index
    %c0_29 = arith.constant 0 : index
    %55 = vector.load %arg7[%c0_27, %c5, %c0_28, %c0_29] : memref<1x8x8x8xf32, #tpu.memory_space<vmem>>, vector<1x1x8x8xf32>
    %56 = vector.shape_cast %55 : vector<1x1x8x8xf32> to vector<1x8x8xf32>
    %57 = vector.shape_cast %54 : vector<1x8x8xf32> to vector<1x1x8x8xf32>
    tpu.vector_store %arg7[%c0_27, %c5, %c0_28, %c0_29], %57 {strides = array<i32>} : memref<1x8x8x8xf32, #tpu.memory_space<vmem>>, vector<1x1x8x8xf32>,
    %58 = vector.extract_strided_slice %27 {offsets = [6, 0, 0, 0], sizes = [1, 1, 8, 8], strides = [1, 1, 1, 1]} : vector<8x1x8x8xf32> to vector<1x1x8x8xf32>
    %59 = vector.shape_cast %58 : vector<1x1x8x8xf32> to vector<1x8x8xf32>
    %c0_30 = arith.constant 0 : index
    %c6 = arith.constant 6 : index
    %c0_31 = arith.constant 0 : index
    %c0_32 = arith.constant 0 : index
    %60 = vector.load %arg7[%c0_30, %c6, %c0_31, %c0_32] : memref<1x8x8x8xf32, #tpu.memory_space<vmem>>, vector<1x1x8x8xf32>
    %61 = vector.shape_cast %60 : vector<1x1x8x8xf32> to vector<1x8x8xf32>
    %62 = vector.shape_cast %59 : vector<1x8x8xf32> to vector<1x1x8x8xf32>
    tpu.vector_store %arg7[%c0_30, %c6, %c0_31, %c0_32], %62 {strides = array<i32>} : memref<1x8x8x8xf32, #tpu.memory_space<vmem>>, vector<1x1x8x8xf32>,
    %63 = vector.extract_strided_slice %27 {offsets = [7, 0, 0, 0], sizes = [1, 1, 8, 8], strides = [1, 1, 1, 1]} : vector<8x1x8x8xf32> to vector<1x1x8x8xf32>
    %64 = vector.shape_cast %63 : vector<1x1x8x8xf32> to vector<1x8x8xf32>
    %c0_33 = arith.constant 0 : index
    %c7 = arith.constant 7 : index
    %c0_34 = arith.constant 0 : index
    %c0_35 = arith.constant 0 : index
    %65 = vector.load %arg7[%c0_33, %c7, %c0_34, %c0_35] : memref<1x8x8x8xf32, #tpu.memory_space<vmem>>, vector<1x1x8x8xf32>
    %66 = vector.shape_cast %65 : vector<1x1x8x8xf32> to vector<1x8x8xf32>
    %67 = vector.shape_cast %64 : vector<1x8x8xf32> to vector<1x1x8x8xf32>
    tpu.vector_store %arg7[%c0_33, %c7, %c0_34, %c0_35], %67 {strides = array<i32>} : memref<1x8x8x8xf32, #tpu.memory_space<vmem>>, vector<1x1x8x8xf32>,
    %68 = arith.truncf %26 : vector<8x8x8xf32> to vector<8x8x8xbf16>
    %69 = arith.truncf %14 : vector<8x8x4xf32> to vector<8x8x4xbf16>
    "tpu.trace_start"() <{level = 10 : i32, message = "nls,nsv->nlv"}> : () -> ()
    %cst_36 = arith.constant dense<0.000000e+00> : vector<8x8x4xf32>
    %70 = tpu.matmul %68, %69, %cst_36 {dimension_numbers = #tpu.dot_dimension_numbers<[2], [1], [1], [2], [0, 0, 0, 1, 1, 2], [0], [0]>} : vector<8x8x8xbf16>, vector<8x8x4xbf16>, vector<8x8x4xf32> -> vector<8x8x4xf32>
    "tpu.trace_stop"() : () -> ()
    %71 = arith.truncf %70 : vector<8x8x4xf32> to vector<8x8x4xbf16>
    %c0_37 = arith.constant 0 : index
    %c0_38 = arith.constant 0 : index
    %c0_39 = arith.constant 0 : index
    %72 = vector.load %arg4[%c0_37, %c0_38, %c0_39] : memref<8x4x32xf32, #tpu.memory_space<vmem>>, vector<8x4x32xf32>
    %73 = arith.truncf %72 : vector<8x4x32xf32> to vector<8x4x32xbf16>
    "tpu.trace_start"() <{level = 10 : i32, message = "hmv,hvd->hmd"}> : () -> ()
    %cst_40 = arith.constant dense<0.000000e+00> : vector<8x8x32xf32>
    %74 = tpu.matmul %71, %73, %cst_40 {dimension_numbers = #tpu.dot_dimension_numbers<[2], [1], [1], [2], [0, 0, 0, 1, 1, 2], [0], [0]>} : vector<8x8x4xbf16>, vector<8x4x32xbf16>, vector<8x8x32xf32> -> vector<8x8x32xf32>
    "tpu.trace_stop"() : () -> ()
    %cst_41 = arith.constant dense<0.000000e+00> : vector<8x32xf32>
    %75 = vector.multi_reduction <add>, %74, %cst_41 [0] : vector<8x8x32xf32> to vector<8x32xf32>
    %c0_42 = arith.constant 0 : index
    %c0_43 = arith.constant 0 : index
    %76 = vector.load %arg5[%c0_42, %c0_43] : memref<1x32xf32, #tpu.memory_space<vmem>>, vector<1x32xf32>
    %77 = vector.broadcast %76 : vector<1x32xf32> to vector<8x32xf32>
    %78 = arith.addf %75, %77 : vector<8x32xf32>
    %79 = vector.shape_cast %78 : vector<8x32xf32> to vector<1x8x32xf32>
    %c0_44 = arith.constant 0 : index
    %c0_45 = arith.constant 0 : index
    %c0_46 = arith.constant 0 : index
    %80 = vector.load %arg6[%c0_44, %c0_45, %c0_46] : memref<1x8x32xf32, #tpu.memory_space<vmem>>, vector<1x8x32xf32>
    tpu.vector_store %arg6[%c0_44, %c0_45, %c0_46], %79 {strides = array<i32>} : memref<1x8x32xf32, #tpu.memory_space<vmem>>, vector<1x8x32xf32>,
    return
  }
  func.func @transform_0(%arg0: i32) -> (i32, i32, i32) {
    %c0_i32 = arith.constant 0 : i32
    %c0_i32_0 = arith.constant 0 : i32
    %c0_i32_1 = arith.constant 0 : i32
    return %arg0, %c0_i32, %c0_i32_0 : i32, i32, i32
  }
  func.func @transform_1(%arg0: i32) -> (i32, i32, i32) {
    %c0_i32 = arith.constant 0 : i32
    %c0_i32_0 = arith.constant 0 : i32
    %c0_i32_1 = arith.constant 0 : i32
    %c0_i32_2 = arith.constant 0 : i32
    return %c0_i32, %c0_i32_0, %c0_i32_1 : i32, i32, i32
  }
  func.func @transform_2(%arg0: i32) -> (i32, i32, i32) {
    %c0_i32 = arith.constant 0 : i32
    %c0_i32_0 = arith.constant 0 : i32
    %c0_i32_1 = arith.constant 0 : i32
    %c0_i32_2 = arith.constant 0 : i32
    return %c0_i32, %c0_i32_0, %c0_i32_1 : i32, i32, i32
  }
  func.func @transform_3(%arg0: i32) -> (i32, i32, i32) {
    %c0_i32 = arith.constant 0 : i32
    %c0_i32_0 = arith.constant 0 : i32
    %c0_i32_1 = arith.constant 0 : i32
    %c0_i32_2 = arith.constant 0 : i32
    return %c0_i32, %c0_i32_0, %c0_i32_1 : i32, i32, i32
  }
  func.func @transform_4(%arg0: i32) -> (i32, i32) {
    %c0_i32 = arith.constant 0 : i32
    %c0_i32_0 = arith.constant 0 : i32
    %c0_i32_1 = arith.constant 0 : i32
    return %c0_i32, %c0_i32_0 : i32, i32
  }
  func.func @transform_5(%arg0: i32) -> (i32, i32, i32) {
    %c0_i32 = arith.constant 0 : i32
    %c0_i32_0 = arith.constant 0 : i32
    %c0_i32_1 = arith.constant 0 : i32
    return %arg0, %c0_i32, %c0_i32_0 : i32, i32, i32
  }
  func.func @transform_6(%arg0: i32) -> (i32, i32, i32, i32) {
    %c0_i32 = arith.constant 0 : i32
    %c0_i32_0 = arith.constant 0 : i32
    %c0_i32_1 = arith.constant 0 : i32
    %c0_i32_2 = arith.constant 0 : i32
    return %arg0, %c0_i32, %c0_i32_0, %c0_i32_1 : i32, i32, i32, i32
  }
}

module attributes {stable_mosaic.version = 11 : i64} {
  func.func @kernel(%arg0: i32, %arg1: memref<1x8x32xf32, #tpu.memory_space<vmem>>, %arg2: memref<8x12x32xf32, #tpu.memory_space<vmem>>, %arg3: memref<8x1x12xf32, #tpu.memory_space<vmem>>, %arg4: memref<8x4x32xf32, #tpu.memory_space<vmem>>, %arg5: memref<1x32xf32, #tpu.memory_space<vmem>>, %arg6: memref<1x8x32xf32, #tpu.memory_space<vmem>>, %arg7: memref<1x8x8x8xf32, #tpu.memory_space<vmem>>) attributes {dimension_semantics = [#tpu.dimension_semantics<parallel>], iteration_bounds = array<i64: 2>, scalar_prefetch = 0 : i64, scratch_operands = 0 : i64, tpu.core_type = #tpu.core_type<tc>, window_params = [{transform_indices = @transform_0, window_bounds = array<i64: 1, 8, 32>}, {pipeline_mode = #tpu.pipeline_mode<synchronous>, transform_indices = @transform_1, window_bounds = array<i64: 8, 12, 32>}, {pipeline_mode = #tpu.pipeline_mode<synchronous>, transform_indices = @transform_2, window_bounds = array<i64: 8, 1, 12>}, {pipeline_mode = #tpu.pipeline_mode<synchronous>, transform_indices = @transform_3, window_bounds = array<i64: 8, 4, 32>}, {pipeline_mode = #tpu.pipeline_mode<synchronous>, transform_indices = @transform_4, window_bounds = array<i64: 1, 32>}, {transform_indices = @transform_5, window_bounds = array<i64: 1, 8, 32>}, {transform_indices = @transform_6, window_bounds = array<i64: 1, 8, 8, 8>}]} {
    %c0 = arith.constant 0 : index
    %c0_0 = arith.constant 0 : index
    %c0_1 = arith.constant 0 : index
    %0 = vector.load %arg1[%c0, %c0_0, %c0_1] : memref<1x8x32xf32, #tpu.memory_space<vmem>>, vector<1x8x32xf32>
    %1 = vector.shape_cast %0 : vector<1x8x32xf32> to vector<8x32xf32>
    %2 = vector.shape_cast %1 : vector<8x32xf32> to vector<1x8x32xf32>
    %3 = vector.shape_cast %2 : vector<1x8x32xf32> to vector<1x8x32xf32>
    %4 = vector.broadcast %3 : vector<1x8x32xf32> to vector<8x8x32xf32>
    %5 = arith.truncf %4 : vector<8x8x32xf32> to vector<8x8x32xbf16>
    %c0_2 = arith.constant 0 : index
    %c0_3 = arith.constant 0 : index
    %c0_4 = arith.constant 0 : index
    %6 = vector.load %arg2[%c0_2, %c0_3, %c0_4] : memref<8x12x32xf32, #tpu.memory_space<vmem>>, vector<8x12x32xf32>
    %7 = arith.truncf %6 : vector<8x12x32xf32> to vector<8x12x32xbf16>
    "tpu.trace_start"() <{level = 10 : i32, message = "hmd,hcd->hmc"}> : () -> ()
    %cst = arith.constant dense<0.000000e+00> : vector<8x8x12xf32>
    %8 = tpu.matmul %5, %7, %cst {dimension_numbers = #tpu.dot_dimension_numbers<[2], [2], [1], [1], [0, 0, 0, 1, 1, 1], [0], [0]>} : vector<8x8x32xbf16>, vector<8x12x32xbf16>, vector<8x8x12xf32> -> vector<8x8x12xf32>
    "tpu.trace_stop"() : () -> ()
    %c0_5 = arith.constant 0 : index
    %c0_6 = arith.constant 0 : index
    %c0_7 = arith.constant 0 : index
    %9 = vector.load %arg3[%c0_5, %c0_6, %c0_7] : memref<8x1x12xf32, #tpu.memory_space<vmem>>, vector<8x1x12xf32>
    %10 = vector.broadcast %9 : vector<8x1x12xf32> to vector<8x8x12xf32>
    %11 = arith.addf %8, %10 : vector<8x8x12xf32>
    %12 = vector.extract_strided_slice %11 {offsets = [0, 0, 0], sizes = [8, 8, 4], strides = [1, 1, 1]} : vector<8x8x12xf32> to vector<8x8x4xf32>
    %13 = vector.extract_strided_slice %11 {offsets = [0, 0, 4], sizes = [8, 8, 4], strides = [1, 1, 1]} : vector<8x8x12xf32> to vector<8x8x4xf32>
    %14 = vector.extract_strided_slice %11 {offsets = [0, 0, 8], sizes = [8, 8, 4], strides = [1, 1, 1]} : vector<8x8x12xf32> to vector<8x8x4xf32>
    %15 = arith.truncf %12 : vector<8x8x4xf32> to vector<8x8x4xbf16>
    %16 = arith.truncf %13 : vector<8x8x4xf32> to vector<8x8x4xbf16>
    "tpu.trace_start"() <{level = 10 : i32, message = "nle,nse->nls"}> : () -> ()
    %cst_8 = arith.constant dense<0.000000e+00> : vector<8x8x8xf32>
    %17 = tpu.matmul %15, %16, %cst_8 {dimension_numbers = #tpu.dot_dimension_numbers<[2], [2], [1], [1], [0, 0, 0, 1, 1, 1], [0], [0]>} : vector<8x8x4xbf16>, vector<8x8x4xbf16>, vector<8x8x8xf32> -> vector<8x8x8xf32>
    "tpu.trace_stop"() : () -> ()
    %cst_9 = arith.constant dense<0xFF800000> : vector<8x8xf32>
    %18 = vector.multi_reduction <maximumf>, %17, %cst_9 [2] : vector<8x8x8xf32> to vector<8x8xf32>
    %19 = vector.shape_cast %18 : vector<8x8xf32> to vector<8x8x1xf32>
    %20 = vector.broadcast %19 : vector<8x8x1xf32> to vector<8x8x8xf32>
    %21 = arith.subf %17, %20 : vector<8x8x8xf32>
    %22 = math.exp %21 : vector<8x8x8xf32>
    %cst_10 = arith.constant dense<0.000000e+00> : vector<8x8xf32>
    %23 = vector.multi_reduction <add>, %22, %cst_10 [2] : vector<8x8x8xf32> to vector<8x8xf32>
    %24 = vector.shape_cast %23 : vector<8x8xf32> to vector<8x8x1xf32>
    %25 = vector.broadcast %24 : vector<8x8x1xf32> to vector<8x8x8xf32>
    %26 = arith.divf %22, %25 : vector<8x8x8xf32>
    %27 = vector.shape_cast %26 : vector<8x8x8xf32> to vector<8x1x8x8xf32>
    %28 = vector.extract_strided_slice %27 {offsets = [0, 0, 0, 0], sizes = [1, 1, 8, 8], strides = [1, 1, 1, 1]} : vector<8x1x8x8xf32> to vector<1x1x8x8xf32>
    %29 = vector.shape_cast %28 : vector<1x1x8x8xf32> to vector<1x8x8xf32>
    %c0_11 = arith.constant 0 : index
    %c0_12 = arith.constant 0 : index
    %c0_13 = arith.constant 0 : index
    %c0_14 = arith.constant 0 : index
    %30 = vector.load %arg7[%c0_11, %c0_12, %c0_13, %c0_14] : memref<1x8x8x8xf32, #tpu.memory_space<vmem>>, vector<1x1x8x8xf32>
    %31 = vector.shape_cast %30 : vector<1x1x8x8xf32> to vector<1x8x8xf32>
    %32 = vector.shape_cast %29 : vector<1x8x8xf32> to vector<1x1x8x8xf32>
    tpu.vector_store %arg7[%c0_11, %c0_12, %c0_13, %c0_14], %32 {strides = array<i32>} : memref<1x8x8x8xf32, #tpu.memory_space<vmem>>, vector<1x1x8x8xf32>,
    %33 = vector.extract_strided_slice %27 {offsets = [1, 0, 0, 0], sizes = [1, 1, 8, 8], strides = [1, 1, 1, 1]} : vector<8x1x8x8xf32> to vector<1x1x8x8xf32>
    %34 = vector.shape_cast %33 : vector<1x1x8x8xf32> to vector<1x8x8xf32>
    %c0_15 = arith.constant 0 : index
    %c1 = arith.constant 1 : index
    %c0_16 = arith.constant 0 : index
    %c0_17 = arith.constant 0 : index
    %35 = vector.load %arg7[%c0_15, %c1, %c0_16, %c0_17] : memref<1x8x8x8xf32, #tpu.memory_space<vmem>>, vector<1x1x8x8xf32>
    %36 = vector.shape_cast %35 : vector<1x1x8x8xf32> to vector<1x8x8xf32>
    %37 = vector.shape_cast %34 : vector<1x8x8xf32> to vector<1x1x8x8xf32>
    tpu.vector_store %arg7[%c0_15, %c1, %c0_16, %c0_17], %37 {strides = array<i32>} : memref<1x8x8x8xf32, #tpu.memory_space<vmem>>, vector<1x1x8x8xf32>,
    %38 = vector.extract_strided_slice %27 {offsets = [2, 0, 0, 0], sizes = [1, 1, 8, 8], strides = [1, 1, 1, 1]} : vector<8x1x8x8xf32> to vector<1x1x8x8xf32>
    %39 = vector.shape_cast %38 : vector<1x1x8x8xf32> to vector<1x8x8xf32>
    %c0_18 = arith.constant 0 : index
    %c2 = arith.constant 2 : index
    %c0_19 = arith.constant 0 : index
    %c0_20 = arith.constant 0 : index
    %40 = vector.load %arg7[%c0_18, %c2, %c0_19, %c0_20] : memref<1x8x8x8xf32, #tpu.memory_space<vmem>>, vector<1x1x8x8xf32>
    %41 = vector.shape_cast %40 : vector<1x1x8x8xf32> to vector<1x8x8xf32>
    %42 = vector.shape_cast %39 : vector<1x8x8xf32> to vector<1x1x8x8xf32>
    tpu.vector_store %arg7[%c0_18, %c2, %c0_19, %c0_20], %42 {strides = array<i32>} : memref<1x8x8x8xf32, #tpu.memory_space<vmem>>, vector<1x1x8x8xf32>,
    %43 = vector.extract_strided_slice %27 {offsets = [3, 0, 0, 0], sizes = [1, 1, 8, 8], strides = [1, 1, 1, 1]} : vector<8x1x8x8xf32> to vector<1x1x8x8xf32>
    %44 = vector.shape_cast %43 : vector<1x1x8x8xf32> to vector<1x8x8xf32>
    %c0_21 = arith.constant 0 : index
    %c3 = arith.constant 3 : index
    %c0_22 = arith.constant 0 : index
    %c0_23 = arith.constant 0 : index
    %45 = vector.load %arg7[%c0_21, %c3, %c0_22, %c0_23] : memref<1x8x8x8xf32, #tpu.memory_space<vmem>>, vector<1x1x8x8xf32>
    %46 = vector.shape_cast %45 : vector<1x1x8x8xf32> to vector<1x8x8xf32>
    %47 = vector.shape_cast %44 : vector<1x8x8xf32> to vector<1x1x8x8xf32>
    tpu.vector_store %arg7[%c0_21, %c3, %c0_22, %c0_23], %47 {strides = array<i32>} : memref<1x8x8x8xf32, #tpu.memory_space<vmem>>, vector<1x1x8x8xf32>,
    %48 = vector.extract_strided_slice %27 {offsets = [4, 0, 0, 0], sizes = [1, 1, 8, 8], strides = [1, 1, 1, 1]} : vector<8x1x8x8xf32> to vector<1x1x8x8xf32>
    %49 = vector.shape_cast %48 : vector<1x1x8x8xf32> to vector<1x8x8xf32>
    %c0_24 = arith.constant 0 : index
    %c4 = arith.constant 4 : index
    %c0_25 = arith.constant 0 : index
    %c0_26 = arith.constant 0 : index
    %50 = vector.load %arg7[%c0_24, %c4, %c0_25, %c0_26] : memref<1x8x8x8xf32, #tpu.memory_space<vmem>>, vector<1x1x8x8xf32>
    %51 = vector.shape_cast %50 : vector<1x1x8x8xf32> to vector<1x8x8xf32>
    %52 = vector.shape_cast %49 : vector<1x8x8xf32> to vector<1x1x8x8xf32>
    tpu.vector_store %arg7[%c0_24, %c4, %c0_25, %c0_26], %52 {strides = array<i32>} : memref<1x8x8x8xf32, #tpu.memory_space<vmem>>, vector<1x1x8x8xf32>,
    %53 = vector.extract_strided_slice %27 {offsets = [5, 0, 0, 0], sizes = [1, 1, 8, 8], strides = [1, 1, 1, 1]} : vector<8x1x8x8xf32> to vector<1x1x8x8xf32>
    %54 = vector.shape_cast %53 : vector<1x1x8x8xf32> to vector<1x8x8xf32>
    %c0_27 = arith.constant 0 : index
    %c5 = arith.constant 5 : index
    %c0_28 = arith.constant 0 : index
    %c0_29 = arith.constant 0 : index
    %55 = vector.load %arg7[%c0_27, %c5, %c0_28, %c0_29] : memref<1x8x8x8xf32, #tpu.memory_space<vmem>>, vector<1x1x8x8xf32>
    %56 = vector.shape_cast %55 : vector<1x1x8x8xf32> to vector<1x8x8xf32>
    %57 = vector.shape_cast %54 : vector<1x8x8xf32> to vector<1x1x8x8xf32>
    tpu.vector_store %arg7[%c0_27, %c5, %c0_28, %c0_29], %57 {strides = array<i32>} : memref<1x8x8x8xf32, #tpu.memory_space<vmem>>, vector<1x1x8x8xf32>,
    %58 = vector.extract_strided_slice %27 {offsets = [6, 0, 0, 0], sizes = [1, 1, 8, 8], strides = [1, 1, 1, 1]} : vector<8x1x8x8xf32> to vector<1x1x8x8xf32>
    %59 = vector.shape_cast %58 : vector<1x1x8x8xf32> to vector<1x8x8xf32>
    %c0_30 = arith.constant 0 : index
    %c6 = arith.constant 6 : index
    %c0_31 = arith.constant 0 : index
    %c0_32 = arith.constant 0 : index
    %60 = vector.load %arg7[%c0_30, %c6, %c0_31, %c0_32] : memref<1x8x8x8xf32, #tpu.memory_space<vmem>>, vector<1x1x8x8xf32>
    %61 = vector.shape_cast %60 : vector<1x1x8x8xf32> to vector<1x8x8xf32>
    %62 = vector.shape_cast %59 : vector<1x8x8xf32> to vector<1x1x8x8xf32>
    tpu.vector_store %arg7[%c0_30, %c6, %c0_31, %c0_32], %62 {strides = array<i32>} : memref<1x8x8x8xf32, #tpu.memory_space<vmem>>, vector<1x1x8x8xf32>,
    %63 = vector.extract_strided_slice %27 {offsets = [7, 0, 0, 0], sizes = [1, 1, 8, 8], strides = [1, 1, 1, 1]} : vector<8x1x8x8xf32> to vector<1x1x8x8xf32>
    %64 = vector.shape_cast %63 : vector<1x1x8x8xf32> to vector<1x8x8xf32>
    %c0_33 = arith.constant 0 : index
    %c7 = arith.constant 7 : index
    %c0_34 = arith.constant 0 : index
    %c0_35 = arith.constant 0 : index
    %65 = vector.load %arg7[%c0_33, %c7, %c0_34, %c0_35] : memref<1x8x8x8xf32, #tpu.memory_space<vmem>>, vector<1x1x8x8xf32>
    %66 = vector.shape_cast %65 : vector<1x1x8x8xf32> to vector<1x8x8xf32>
    %67 = vector.shape_cast %64 : vector<1x8x8xf32> to vector<1x1x8x8xf32>
    tpu.vector_store %arg7[%c0_33, %c7, %c0_34, %c0_35], %67 {strides = array<i32>} : memref<1x8x8x8xf32, #tpu.memory_space<vmem>>, vector<1x1x8x8xf32>,
    %68 = arith.truncf %26 : vector<8x8x8xf32> to vector<8x8x8xbf16>
    %69 = arith.truncf %14 : vector<8x8x4xf32> to vector<8x8x4xbf16>
    "tpu.trace_start"() <{level = 10 : i32, message = "nls,nsv->nlv"}> : () -> ()
    %cst_36 = arith.constant dense<0.000000e+00> : vector<8x8x4xf32>
    %70 = tpu.matmul %68, %69, %cst_36 {dimension_numbers = #tpu.dot_dimension_numbers<[2], [1], [1], [2], [0, 0, 0, 1, 1, 2], [0], [0]>} : vector<8x8x8xbf16>, vector<8x8x4xbf16>, vector<8x8x4xf32> -> vector<8x8x4xf32>
    "tpu.trace_stop"() : () -> ()
    %71 = arith.truncf %70 : vector<8x8x4xf32> to vector<8x8x4xbf16>
    %c0_37 = arith.constant 0 : index
    %c0_38 = arith.constant 0 : index
    %c0_39 = arith.constant 0 : index
    %72 = vector.load %arg4[%c0_37, %c0_38, %c0_39] : memref<8x4x32xf32, #tpu.memory_space<vmem>>, vector<8x4x32xf32>
    %73 = arith.truncf %72 : vector<8x4x32xf32> to vector<8x4x32xbf16>
    "tpu.trace_start"() <{level = 10 : i32, message = "hmv,hvd->hmd"}> : () -> ()
    %cst_40 = arith.constant dense<0.000000e+00> : vector<8x8x32xf32>
    %74 = tpu.matmul %71, %73, %cst_40 {dimension_numbers = #tpu.dot_dimension_numbers<[2], [1], [1], [2], [0, 0, 0, 1, 1, 2], [0], [0]>} : vector<8x8x4xbf16>, vector<8x4x32xbf16>, vector<8x8x32xf32> -> vector<8x8x32xf32>
    "tpu.trace_stop"() : () -> ()
    %cst_41 = arith.constant dense<0.000000e+00> : vector<8x32xf32>
    %75 = vector.multi_reduction <add>, %74, %cst_41 [0] : vector<8x8x32xf32> to vector<8x32xf32>
    %c0_42 = arith.constant 0 : index
    %c0_43 = arith.constant 0 : index
    %76 = vector.load %arg5[%c0_42, %c0_43] : memref<1x32xf32, #tpu.memory_space<vmem>>, vector<1x32xf32>
    %77 = vector.broadcast %76 : vector<1x32xf32> to vector<8x32xf32>
    %78 = arith.addf %75, %77 : vector<8x32xf32>
    %79 = vector.shape_cast %78 : vector<8x32xf32> to vector<1x8x32xf32>
    %c0_44 = arith.constant 0 : index
    %c0_45 = arith.constant 0 : index
    %c0_46 = arith.constant 0 : index
    %80 = vector.load %arg6[%c0_44, %c0_45, %c0_46] : memref<1x8x32xf32, #tpu.memory_space<vmem>>, vector<1x8x32xf32>
    tpu.vector_store %arg6[%c0_44, %c0_45, %c0_46], %79 {strides = array<i32>} : memref<1x8x32xf32, #tpu.memory_space<vmem>>, vector<1x8x32xf32>,
    return
  }
  func.func @transform_0(%arg0: i32) -> (i32, i32, i32) {
    %c0_i32 = arith.constant 0 : i32
    %c0_i32_0 = arith.constant 0 : i32
    %c0_i32_1 = arith.constant 0 : i32
    return %arg0, %c0_i32, %c0_i32_0 : i32, i32, i32
  }
  func.func @transform_1(%arg0: i32) -> (i32, i32, i32) {
    %c0_i32 = arith.constant 0 : i32
    %c0_i32_0 = arith.constant 0 : i32
    %c0_i32_1 = arith.constant 0 : i32
    %c0_i32_2 = arith.constant 0 : i32
    return %c0_i32, %c0_i32_0, %c0_i32_1 : i32, i32, i32
  }
  func.func @transform_2(%arg0: i32) -> (i32, i32, i32) {
    %c0_i32 = arith.constant 0 : i32
    %c0_i32_0 = arith.constant 0 : i32
    %c0_i32_1 = arith.constant 0 : i32
    %c0_i32_2 = arith.constant 0 : i32
    return %c0_i32, %c0_i32_0, %c0_i32_1 : i32, i32, i32
  }
  func.func @transform_3(%arg0: i32) -> (i32, i32, i32) {
    %c0_i32 = arith.constant 0 : i32
    %c0_i32_0 = arith.constant 0 : i32
    %c0_i32_1 = arith.constant 0 : i32
    %c0_i32_2 = arith.constant 0 : i32
    return %c0_i32, %c0_i32_0, %c0_i32_1 : i32, i32, i32
  }
  func.func @transform_4(%arg0: i32) -> (i32, i32) {
    %c0_i32 = arith.constant 0 : i32
    %c0_i32_0 = arith.constant 0 : i32
    %c0_i32_1 = arith.constant 0 : i32
    return %c0_i32, %c0_i32_0 : i32, i32
  }
  func.func @transform_5(%arg0: i32) -> (i32, i32, i32) {
    %c0_i32 = arith.constant 0 : i32
    %c0_i32_0 = arith.constant 0 : i32
    %c0_i32_1 = arith.constant 0 : i32
    return %arg0, %c0_i32, %c0_i32_0 : i32, i32, i32
  }
  func.func @transform_6(%arg0: i32) -> (i32, i32, i32, i32) {
    %c0_i32 = arith.constant 0 : i32
    %c0_i32_0 = arith.constant 0 : i32
    %c0_i32_1 = arith.constant 0 : i32
    %c0_i32_2 = arith.constant 0 : i32
    return %arg0, %c0_i32, %c0_i32_0, %c0_i32_1 : i32, i32, i32, i32
  }
}

</mosaic_0001>

<bundles_post_ra>
// kernel: tpu_custom_call.1
= control target key start
LH: loop header
LB: loop body
LE: loop exit
PB: predicated region body
PF: predicated region fallthrough
CT: control target
= control target key end

     0   :  { %12 = vsyncpa [#allocation3], 0  ;;  %s3190_s0 = inlined_call_operand.vmem [shape: f32[2,8,32], index: 0, kind: input, shape index: {}]   ;;  %s3191_s1 = inlined_call_operand.vmem [shape: f32[8,12,32], index: 1, kind: input, shape index: {}]   ;;  %s3192_s2 = inlined_call_operand.vmem [shape: f32[8,1,12], index: 2, kind: input, shape index: {}]   ;;  %s3193_s3 = inlined_call_operand.vmem [shape: f32[8,4,32], index: 3, kind: input, shape index: {}]   ;;  %s3194_s4 = inlined_call_operand.vmem [shape: f32[1,32], index: 4, kind: input, shape index: {}]   ;;  %s3195_s5 = inlined_call_operand.hbm [shape: f32[2,8,32], index: 5, kind: output, shape index: {0}]   ;;  %s3196_s6 = inlined_call_operand.hbm [shape: f32[2,8,8,8], index: 6, kind: output, shape index: {1}]  }
   0x1   :  { %14 = vsyncpa [#allocation3 + $0x1], 0 }
   0x2   :  { %15 = vsyncpa [#allocation5], 0 }
   0x3   :  { %17 = vsyncpa [#allocation5 + $0x1], 0  ;;  %s2666_s21 = smov 0   ;;  %s2668_s22 = smov 0  }
   0x4   :  { %s2670_s23 = smov 0   ;;  %s2672_s24 = smov 0  }
   0x5 LB: > { %s2687_s25 = sadd.s32 4294967295, %s2621_s24   ;;  %s2130_s26 = sadd.s32 4294967294, %s2621_s24   ;;  %s2621_s24 = sphi %s2672_s24, %s3202_s24   ;;  %s2617_s23 = sphi %s2670_s23, %s3201_s23   ;;  %s2613_s22 = sphi %s2668_s22, %s3200_s22   ;;  %s2609_s21 = sphi %s2666_s21, %s3199_s21  }
   0x6   : > { %s2691_s27 = sadd.s32 1, %s2621_s24   ;;  %s140_s28 = sadd.s32 1, %s2617_s23 }
   0x7   : > { %s137_s29 = ssub.s32 %s2621_s24, %s2691_s27  ;;  %p150_p0 = scmp.ne.s32.totalorder %s2617_s23, %s2613_s22 }
   0x8   : > { %p138_p1 = scmp.eq.s32.totalorder %s137_s29, 0  ;;  %p151_p2 = scmp.eq.s32.totalorder %s2687_s25, 1 }
   0x9   : > { %p156_p3 = scmp.ne.s32.totalorder %s2613_s22, %s2609_s21  ;;  %p157_p4 = scmp.eq.s32.totalorder %s2130_s26, 1 }
   0xa   : > { %s2702_s30 = scalar_select %p138_p1, %s2617_s23, %s140_s28  }
   0xb   : > { %p2704_p5 = por %p151_p2, %p150_p0  ;;  %p2708_p6 = por %p157_p4, %p156_p3 }
   0xc   : > { %p2133_p7 = scmp.ge.s32.totalorder %s2621_s24, 1  ;;  %p220_p8 = scmp.lt.s32.totalorder %s2621_s24, 3 }
   0xe   : > { %p221_p9 = pnand %p2133_p7, %p220_p8 }
   0xf   : > { %p254_p10 = scmp.lt.s32.totalorder (!%p221_p9), %s2687_s25, 1  ;;  %s2625_s20 = smov (!%p221_p9), 124  }
  0x10   : > { %224 = sbr.rel (%p221_p9) target bundleno = 1338 (0x53a), region = 40  ;;  %s2626_s18 = smov (!%p221_p9), 120  }
  0x11   : > { %s2983_s19 = sand.u32 (!%p221_p9), 1, %s2613_s22   ;;  %s2627_s17 = smov (!%p221_p9), [#allocation4]  }
  0x12   : > { %s2010_s15 = scalar_lea.sflag (!%p221_p9), [#allocation5], %s2983_s19 }
  0x15   : > { %v261_v0 = vld [vmem:[%s3191_s1] sm:$0xff]  ;;  %v262_v1 = vld [vmem:[%s3191_s1 + $0x8] sm:$0xf]  ;;  %vm341_vm0 = vcmask 261120   ;;  %v263_v2 = vld [vmem:[%s3191_s1 + $0x10] sm:$0xff]  ;;  %v2623_v3 = vmov 0.0  }
  0x16   : > { %2257 = vmatprep.subr.bf16.mxu0 %v2623_v3  ;;  %2263 = vmatprep.subr.bf16.mxu1 %v2623_v3  ;;  %v277_v4 = vpack.c.bf16 %v262_v1, %v261_v0  ;;  %v264_v5 = vld [vmem:[%s3191_s1 + $0x18] sm:$0xf]  ;;  %vm2624_vm1 = vmmov 0   ;;  %v265_v7 = vld [vmem:[%s3191_s1 + $0x20] sm:$0xff]  ;;  %v266_v8 = vld [vmem:[%s3191_s1 + $0x28] sm:$0xf] }
  0x17   : > { %v278_v6 = vpack.c.bf16 %v264_v5, %v263_v2  ;;  %2259 = vmatprep.mubr.msk.bf16.mxu0 %vm2624_vm1, %v2623_v3  ;;  %2265 = vmatprep.mubr.msk.bf16.mxu1 %vm2624_vm1, %v2623_v3  ;;  %s255_s26 = scalar_select %p254_p10, %s2687_s25, 1  ;;  %v267_v10 = vld [vmem:[%s3191_s1 + $0x30] sm:$0xff]  ;;  %v268_v11 = vld [vmem:[%s3191_s1 + $0x38] sm:$0xf]  ;;  %v279_v13 = vpack.c.bf16 %v266_v8, %v265_v7  ;;  %v269_v19 = vld [vmem:[%s3191_s1 + $0x40] sm:$0xff]  ;;  %vm700_vm2 = vcmask 31744  }
  0x18   : > { %v346_v9 = vsel %vm341_vm0, %v277_v4, 0  ;;  %v280_v14 = vpack.c.bf16 %v268_v11, %v267_v10  ;;  %v270_v20 = vld [vmem:[%s3191_s1 + $0x48] sm:$0xf]  ;;  %v271_v21 = vld [vmem:[%s3191_s1 + $0x50] sm:$0xff]  ;;  %v272_v22 = vld [vmem:[%s3191_s1 + $0x58] sm:$0xf] }
  0x19   : > { %2258 = vmatpush3.bf16.xpose.msra.mxu0 %v346_v9  ;;  %v389_v12 = vsel %vm341_vm0, %v278_v6, 0  ;;  %s2136_s11 = sshll.u32 %s255_s26, 3  ;;  %v432_v17 = vsel %vm341_vm0, %v279_v13, 0  ;;  %v281_v23 = vpack.c.bf16 %v270_v20, %v269_v19  ;;  %v282_v24 = vpack.c.bf16 %v272_v22, %v271_v21  ;;  %v273_v27 = vld [vmem:[%s3191_s1 + $0x60] sm:$0xff]  ;;  %v274_v28 = vld [vmem:[%s3191_s1 + $0x68] sm:$0xf] }
  0x1a   : > { %2264 = vmatpush3.bf16.xpose.msra.mxu1 %v389_v12  ;;  %2269 = vmatprep.subr.bf16.mxu0 %v2623_v3  ;;  %s257_s14 = scalar_lea.vmem %s3190_s0, %s2136_s11  ;;  %v475_v18 = vsel %vm341_vm0, %v280_v14, 0  ;;  %v275_v29 = vld [vmem:[%s3191_s1 + $0x70] sm:$0xff]  ;;  %v276_v30 = vld [vmem:[%s3191_s1 + $0x78] sm:$0xf]  ;;  %v283_v31 = vpack.c.bf16 %v274_v28, %v273_v27  ;;  %v2137_v35 = vld [vmem:[%s3192_s2] ss:$0 sm:$0xff] }
  0x1b   : > { %2275 = vmatprep.subr.bf16.mxu1 %v2623_v3  ;;  %v259_v15 = vld [vmem:[%s257_s14] sm:$0xff]  ;;  %v518_v25 = vsel %vm341_vm0, %v281_v23, 0  ;;  %v561_v26 = vsel %vm341_vm0, %v282_v24, 0  ;;  %v284_v32 = vpack.c.bf16 %v276_v30, %v275_v29  ;;  %vm1207_vm3 = vcmask 1043456   ;;  %s2192_s11 = sshll.u32 %s2687_s25, 10 }
  0x1c   : > { %v260_v16 = vpack.c.bf16 %v259_v15, %v259_v15  ;;  %v604_v33 = vsel %vm341_vm0, %v283_v31, 0  ;;  %v2138_v36 = vld [vmem:[%s3192_s2 + $0x1] ss:$0 sm:$0xff]  ;;  %v2139_v48 = vld [vmem:[%s3192_s2 + $0x2] ss:$0 sm:$0xff]  ;;  %vm1090_vm4 = vcmask 64512   ;;  %s3112_s14 = scalar_lea.hbm %s3196_s6, %s2192_s11 }
  0x1d   : > { %v647_v34 = vsel %vm341_vm0, %v284_v32, 0  ;;  %v2140_v50 = vld [vmem:[%s3192_s2 + $0x3] ss:$0 sm:$0xff]  ;;  %v2141_v62 = vld [vmem:[%s3192_s2 + $0x4] ss:$0 sm:$0xff]  ;;  %vm1614_vm5 = vcmask 1041408  }
  0x1e   : > { %v2142_v0 = vld [vmem:[%s3192_s2 + $0x5] ss:$0 sm:$0xff]  ;;  %v2143_v13 = vld [vmem:[%s3192_s2 + $0x6] ss:$0 sm:$0xff]  ;;  %v2144_v15 = vld [vmem:[%s3192_s2 + $0x7] ss:$0 sm:$0xff] }
  0x20   : > { %2260 = vmatmul.mubr.msk.bf16.vlgmr.msra.gmra.mxu0 %vm341_vm0, %v260_v16 }
  0x21   : > { %2266 = vmatmul.mubr.msk.bf16.vlgmr.msra.gmra.mxu1 %vm341_vm0, %v260_v16  ;;  %2270 = vmatpush3.bf16.xpose.msra.mxu0 %v432_v17 }
  0x22   : > { %2276 = vmatpush3.bf16.xpose.msra.mxu1 %v475_v18  ;;  %2271 = vmatprep.mubr.msk.bf16.mxu0 %vm2624_vm1, %v2623_v3 }
  0x23   : > { %2277 = vmatprep.mubr.msk.bf16.mxu1 %vm2624_vm1, %v2623_v3  ;;  %2281 = vmatprep.subr.bf16.mxu0 %v2623_v3 }
  0x24   : > { %2287 = vmatprep.subr.bf16.mxu1 %v2623_v3 }
  0x28   : > { %2272 = vmatmul.mubr.msk.bf16.vlgmr.msra.gmra.mxu0 %vm341_vm0, %v260_v16 }
  0x29   : > { %2278 = vmatmul.mubr.msk.bf16.vlgmr.msra.gmra.mxu1 %vm341_vm0, %v260_v16  ;;  %2282 = vmatpush3.bf16.xpose.msra.mxu0 %v518_v25 }
  0x2a   : > { %2288 = vmatpush3.bf16.xpose.msra.mxu1 %v561_v26  ;;  %2283 = vmatprep.mubr.msk.bf16.mxu0 %vm2624_vm1, %v2623_v3 }
  0x2b   : > { %2289 = vmatprep.mubr.msk.bf16.mxu1 %vm2624_vm1, %v2623_v3  ;;  %2293 = vmatprep.subr.bf16.mxu0 %v2623_v3 }
  0x2c   : > { %2299 = vmatprep.subr.bf16.mxu1 %v2623_v3 }
  0x30   : > { %2284 = vmatmul.mubr.msk.bf16.vlgmr.msra.gmra.mxu0 %vm341_vm0, %v260_v16 }
  0x31   : > { %2290 = vmatmul.mubr.msk.bf16.vlgmr.msra.gmra.mxu1 %vm341_vm0, %v260_v16  ;;  %2294 = vmatpush3.bf16.xpose.msra.mxu0 %v604_v33 }
  0x32   : > { %2300 = vmatpush3.bf16.xpose.msra.mxu1 %v647_v34  ;;  %2295 = vmatprep.mubr.msk.bf16.mxu0 %vm2624_vm1, %v2623_v3 }
  0x33   : > { %2301 = vmatprep.mubr.msk.bf16.mxu1 %vm2624_vm1, %v2623_v3  ;;  %2305 = vmatprep.subr.bf16.mxu0 %v2623_v3 }
  0x34   : > { %2311 = vmatprep.subr.bf16.mxu1 %v2623_v3 }
  0x38   : > { %2296 = vmatmul.mubr.msk.bf16.vlgmr.msra.gmra.mxu0 %vm341_vm0, %v260_v16 }
  0x39   : > { %2302 = vmatmul.mubr.msk.bf16.vlgmr.msra.gmra.mxu1 %vm341_vm0, %v260_v16  ;;  %2307 = vmatprep.mubr.msk.bf16.mxu0 %vm2624_vm1, %v2623_v3 }
  0x3a   : > { %2313 = vmatprep.mubr.msk.bf16.mxu1 %vm2624_vm1, %v2623_v3 }
  0xe0   : > { %v382_v37 = vpop.f32.mrf.mxu0 }
  0xe1   : > { %v383_v38 = vadd.f32 %v2137_v35, %v382_v37  ;;  %v425_v39 = vpop.f32.mrf.mxu1 }
  0xe2   : > { %v426_v40 = vadd.f32 %v2138_v36, %v425_v39  ;;  %v2261_v41 = vpop.f32.mrf.mxu0 }
  0xe3   : > { %v2819_v42 = vpack.c.bf16 %v383_v38, %v383_v38  ;;  %v2267_v43 = vpop.f32.mrf.mxu1 }
  0xe4   : > { %v385_v44 = vpop.f32.mrf.mxu0  ;;  %v2821_v45 = vpack.c.bf16 %v426_v40, %v426_v40 }
  0xe5   : > { %v428_v46 = vpop.f32.mrf.mxu1  ;;  %698 = vrot.lane.b32.xlu0 %v2819_v42, %s2625_s20 }
  0xe6   : > { %v2262_v47 = vpop.f32.mrf.mxu0 }
  0xe7   : > { %v2268_v49 = vpop.f32.mrf.mxu1 }
  0xe8   : > { %v468_v51 = vpop.f32.mrf.mxu0 }
  0xe9   : > { %v469_v52 = vadd.f32 %v2139_v48, %v468_v51  ;;  %v511_v53 = vpop.f32.mrf.mxu1  ;;  %748 = vrot.lane.b32.xlu0 %v2821_v45, %s2625_s20 }
  0xea   : > { %v512_v54 = vadd.f32 %v2140_v50, %v511_v53  ;;  %v2273_v55 = vpop.f32.mrf.mxu0 }
  0xeb   : > { %v2833_v56 = vpack.c.bf16 %v469_v52, %v469_v52  ;;  %v2279_v57 = vpop.f32.mrf.mxu1 }
  0xec   : > { %v471_v58 = vpop.f32.mrf.mxu0  ;;  %v2835_v59 = vpack.c.bf16 %v512_v54, %v512_v54 }
  0xed   : > { %v514_v60 = vpop.f32.mrf.mxu1  ;;  %797 = vrot.lane.b32.xlu1 %v2833_v56, %s2625_s20 }
  0xee   : > { %v2274_v61 = vpop.f32.mrf.mxu0 }
  0xef   : > { %v2280_v63 = vpop.f32.mrf.mxu1 }
  0xf0   : > { %v554_v1 = vpop.f32.mrf.mxu0 }
  0xf1   : > { %v555_v2 = vadd.f32 %v2141_v62, %v554_v1  ;;  %v597_v4 = vpop.f32.mrf.mxu1  ;;  %846 = vrot.lane.b32.xlu1 %v2835_v59, %s2625_s20 }
  0xf2   : > { %v598_v5 = vadd.f32 %v2142_v0, %v597_v4  ;;  %v2285_v6 = vpop.f32.mrf.mxu0 }
  0xf3   : > { %v2847_v7 = vpack.c.bf16 %v555_v2, %v555_v2  ;;  %v2291_v8 = vpop.f32.mrf.mxu1 }
  0xf4   : > { %v2849_v9 = vpack.c.bf16 %v598_v5, %v598_v5  ;;  %v557_v10 = vpop.f32.mrf.mxu0 }
  0xf5   : > { %v600_v11 = vpop.f32.mrf.mxu1  ;;  %895 = vrot.lane.b32.xlu0 %v2847_v7, %s2625_s20 }
  0xf6   : > { %v2286_v12 = vpop.f32.mrf.mxu0  ;;  %944 = vrot.lane.b32.xlu1 %v2849_v9, %s2625_s20 }
  0xf7   : > { %v2292_v14 = vpop.f32.mrf.mxu1 }
  0xf8   : > { %v640_v16 = vpop.f32.mrf.mxu0 }
  0xf9   : > { %v641_v17 = vadd.f32 %v2143_v13, %v640_v16  ;;  %v683_v18 = vpop.f32.mrf.mxu1 }
  0xfa   : > { %v684_v19 = vadd.f32 %v2144_v15, %v683_v18  ;;  %v2297_v20 = vpop.f32.mrf.mxu0 }
  0xfb   : > { %v2861_v21 = vpack.c.bf16 %v641_v17, %v641_v17  ;;  %v2303_v22 = vpop.f32.mrf.mxu1 }
  0xfc   : > { %v2863_v23 = vpack.c.bf16 %v684_v19, %v684_v19  ;;  %v643_v24 = vpop.f32.mrf.mxu0 }
  0xfd   : > { %993 = vrot.lane.b32.xlu0 %v2861_v21, %s2625_s20  ;;  %v686_v25 = vpop.f32.mrf.mxu1 }
  0xfe   : > { %1042 = vrot.lane.b32.xlu1 %v2863_v23, %s2625_s20  ;;  %v2298_v26 = vpop.f32.mrf.mxu0  ;;  %s2135_s20 = sshll.u32 %s2983_s19, 6 }
  0xff   : > { %v2304_v27 = vpop.f32.mrf.mxu1  ;;  %s2986_s26 = scalar_lea.vmem [#allocation4], %s2135_s20 }
 0x100   : > { %s2036_s10 = sshll.u32 %s2986_s26, 4  ;;  %s3107_s10 = int_to_ptr.vmem [resolvable:$true] %s2036_s10 }
 0x101   : > { %s2531_s16 = scalar_lea.vmem %s3107_s10, 1024 }
 0x102   : > { %1202 = vrot.lane.b32.xlu1 %v2819_v42, %s2626_s18  ;;  %p2532_p11 = scmp.ne.s32.totalorder %s3107_s10, %s2531_s16 }
 0x104   : > { %p2533_p12 = pnand %p2532_p11, %p2704_p5 }
 0x106   : > { %p2534_p13 = pneg %p2533_p12 }
 0x157   : > { %v699_v28 = vpop.permute.xlu0 %698 }
 0x158   : > { %v705_v29 = vsel %vm700_vm2, %v699_v28, 0 }
 0x159   : > { %2306 = vmatpush3.bf16.xpose.msra.mxu0 %v705_v29 }
 0x15a   : > { %2317 = vmatprep.subr.bf16.mxu0 %v2623_v3 }
 0x15b   : > { %v749_v30 = vpop.permute.xlu0 %748 }
 0x15c   : > { %v754_v31 = vsel %vm700_vm2, %v749_v30, 0 }
 0x15d   : > { %2312 = vmatpush3.bf16.xpose.msra.mxu1 %v754_v31 }
 0x15e   : > { %2323 = vmatprep.subr.bf16.mxu1 %v2623_v3 }
 0x15f   : > { %v798_v32 = vpop.permute.xlu1 %797 }
 0x160   : > { %v803_v33 = vsel %vm700_vm2, %v798_v32, 0  ;;  %2308 = vmatmul.mubr.msk.bf16.vlgmr.msra.gmra.mxu0 %vm700_vm2, %v2819_v42 }
 0x161   : > { %2318 = vmatpush3.bf16.xpose.msra.mxu0 %v803_v33  ;;  %2319 = vmatprep.mubr.msk.bf16.mxu0 %vm2624_vm1, %v2623_v3 }
 0x162   : > { %2329 = vmatprep.subr.bf16.mxu0 %v2623_v3 }
 0x163   : > { %v847_v34 = vpop.permute.xlu1 %846 }
 0x164   : > { %v852_v35 = vsel %vm700_vm2, %v847_v34, 0  ;;  %2314 = vmatmul.mubr.msk.bf16.vlgmr.msra.gmra.mxu1 %vm700_vm2, %v2821_v45 }
 0x165   : > { %2324 = vmatpush3.bf16.xpose.msra.mxu1 %v852_v35  ;;  %2325 = vmatprep.mubr.msk.bf16.mxu1 %vm2624_vm1, %v2623_v3 }
 0x166   : > { %2335 = vmatprep.subr.bf16.mxu1 %v2623_v3 }
 0x167   : > { %v896_v36 = vpop.permute.xlu0 %895 }
 0x168   : > { %v901_v37 = vsel %vm700_vm2, %v896_v36, 0  ;;  %2320 = vmatmul.mubr.msk.bf16.vlgmr.msra.gmra.mxu0 %vm700_vm2, %v2833_v56  ;;  %v945_v38 = vpop.permute.xlu1 %944 }
 0x169   : > { %2330 = vmatpush3.bf16.xpose.msra.mxu0 %v901_v37  ;;  %2331 = vmatprep.mubr.msk.bf16.mxu0 %vm2624_vm1, %v2623_v3  ;;  %v950_v39 = vsel %vm700_vm2, %v945_v38, 0 }
 0x16a   : > { %2341 = vmatprep.subr.bf16.mxu0 %v2623_v3 }
 0x16c   : > { %2326 = vmatmul.mubr.msk.bf16.vlgmr.msra.gmra.mxu1 %vm700_vm2, %v2835_v59 }
 0x16d   : > { %2336 = vmatpush3.bf16.xpose.msra.mxu1 %v950_v39  ;;  %2337 = vmatprep.mubr.msk.bf16.mxu1 %vm2624_vm1, %v2623_v3 }
 0x16e   : > { %2347 = vmatprep.subr.bf16.mxu1 %v2623_v3 }
 0x16f   : > { %v994_v40 = vpop.permute.xlu0 %993 }
 0x170   : > { %v1043_v41 = vpop.permute.xlu1 %1042  ;;  %v999_v42 = vsel %vm700_vm2, %v994_v40, 0  ;;  %2332 = vmatmul.mubr.msk.bf16.vlgmr.msra.gmra.mxu0 %vm700_vm2, %v2847_v7 }
 0x171   : > { %2342 = vmatpush3.bf16.xpose.msra.mxu0 %v999_v42  ;;  %2343 = vmatprep.mubr.msk.bf16.mxu0 %vm2624_vm1, %v2623_v3  ;;  %v1048_v43 = vsel %vm700_vm2, %v1043_v41, 0 }
 0x172   : > { %2353 = vmatprep.subr.bf16.mxu0 %v2623_v3 }
 0x174   : > { %2338 = vmatmul.mubr.msk.bf16.vlgmr.msra.gmra.mxu1 %vm700_vm2, %v2849_v9  ;;  %v1203_v44 = vpop.permute.xlu1 %1202 }
 0x175   : > { %2348 = vmatpush3.bf16.xpose.msra.mxu1 %v1048_v43  ;;  %2349 = vmatprep.mubr.msk.bf16.mxu1 %vm2624_vm1, %v2623_v3  ;;  %v1209_v46 = vsel %vm1207_vm3, %v1203_v44, 0 }
 0x176   : > { %2359 = vmatprep.subr.bf16.mxu1 %v2623_v3 }
 0x178   : > { %2344 = vmatmul.mubr.msk.bf16.vlgmr.msra.gmra.mxu0 %vm700_vm2, %v2861_v21 }
 0x179   : > { %2354 = vmatpush3.bf16.msra.mxu0 %v1209_v46  ;;  %2355 = vmatprep.mubr.msk.bf16.mxu0 %vm2624_vm1, %v2623_v3 }
 0x17a   : > { %2365 = vmatprep.subr.bf16.mxu0 %v2623_v3 }
 0x17c   : > { %2350 = vmatmul.mubr.msk.bf16.vlgmr.msra.gmra.mxu1 %vm700_vm2, %v2863_v23 }
 0x17d   : > { %2361 = vmatprep.mubr.msk.bf16.mxu1 %vm2624_vm1, %v2623_v3 }
 0x220   : > { %v741_v47 = vpop.f32.mrf.mxu0 }
 0x221   : > { %v1091_v48 = vsel %vm1090_vm4, %v741_v47, -inf }
 0x222   : > { %1092 = vmax.xlane.f32.xlu0 %v1091_v48  ;;  %v2309_v49 = vpop.f32.mrf.mxu0 }
 0x224   : > { %v744_v50 = vpop.f32.mrf.mxu0  ;;  %v790_v51 = vpop.f32.mrf.mxu1 }
 0x225   : > { %v1094_v52 = vsel %vm1090_vm4, %v790_v51, -inf }
 0x226   : > { %v2315_v53 = vpop.f32.mrf.mxu1  ;;  %1095 = vmax.xlane.f32.xlu1 %v1094_v52  ;;  %v2310_v54 = vpop.f32.mrf.mxu0 }
 0x228   : > { %v793_v55 = vpop.f32.mrf.mxu1  ;;  %v839_v57 = vpop.f32.mrf.mxu0 }
 0x229   : > { %v1097_v58 = vsel %vm1090_vm4, %v839_v57, -inf }
 0x22a   : > { %v2316_v60 = vpop.f32.mrf.mxu1  ;;  %1098 = vmax.xlane.f32.xlu0 %v1097_v58  ;;  %v2321_v61 = vpop.f32.mrf.mxu0 }
 0x22c   : > { %v842_v62 = vpop.f32.mrf.mxu0  ;;  %v888_v63 = vpop.f32.mrf.mxu1 }
 0x22d   : > { %v1100_v0 = vsel %vm1090_vm4, %v888_v63, -inf }
 0x22e   : > { %v2327_v1 = vpop.f32.mrf.mxu1  ;;  %1101 = vmax.xlane.f32.xlu0 %v1100_v0  ;;  %v2322_v2 = vpop.f32.mrf.mxu0 }
 0x230   : > { %v891_v4 = vpop.f32.mrf.mxu1  ;;  %v2925_v5 = vpop.f32.mrf.mxu0 }
 0x231   : > { %v1103_v6 = vsel %vm1090_vm4, %v2925_v5, -inf }
 0x232   : > { %v2328_v8 = vpop.f32.mrf.mxu1  ;;  %1104 = vmax.xlane.f32.xlu1 %v1103_v6  ;;  %v2333_v10 = vpop.f32.mrf.mxu0 }
 0x234   : > { %v940_v11 = vpop.f32.mrf.mxu0  ;;  %v2929_v12 = vpop.f32.mrf.mxu1 }
 0x235   : > { %v1106_v13 = vsel %vm1090_vm4, %v2929_v12, -inf }
 0x236   : > { %v2339_v14 = vpop.f32.mrf.mxu1  ;;  %1107 = vmax.xlane.f32.xlu0 %v1106_v13  ;;  %v2334_v15 = vpop.f32.mrf.mxu0 }
 0x238   : > { %v989_v16 = vpop.f32.mrf.mxu1  ;;  %v1035_v17 = vpop.f32.mrf.mxu0 }
 0x239   : > { %v1109_v18 = vsel %vm1090_vm4, %v1035_v17, -inf }
 0x23a   : > { %v2340_v19 = vpop.f32.mrf.mxu1  ;;  %1110 = vmax.xlane.f32.xlu1 %v1109_v18  ;;  %v2345_v20 = vpop.f32.mrf.mxu0 }
 0x23c   : > { %v1038_v22 = vpop.f32.mrf.mxu0  ;;  %v1084_v24 = vpop.f32.mrf.mxu1 }
 0x23d   : > { %v1112_v25 = vsel %vm1090_vm4, %v1084_v24, -inf }
 0x23e   : > { %v2351_v26 = vpop.f32.mrf.mxu1  ;;  %1113 = vmax.xlane.f32.xlu0 %v1112_v25  ;;  %v2346_v27 = vpop.f32.mrf.mxu0 }
 0x240   : > { %v1087_v28 = vpop.f32.mrf.mxu1 }
 0x242   : > { %v2352_v29 = vpop.f32.mrf.mxu1 }
 0x24b   : > { %1299 = vrot.lane.b32.xlu1 %v2833_v56, %s2626_s18 }
 0x24f   : > { %1347 = vrot.lane.b32.xlu1 %v2835_v59, %s2626_s18 }
 0x254   : > { %1251 = vrot.lane.b32.xlu0 %v2821_v45, %s2626_s18 }
 0x2ab   : > { %v1093_v30 = vpop.xlane.xlu0 %1092 }
 0x2ac   : > { %v1115_v31 = vsub.f32 %v741_v47, %v1093_v30 }
 0x2ae   : > { %v1123_v32 = vmul.f32 1.442695, %v1115_v31 }
 0x2af   : > { %v1096_v33 = vpop.xlane.xlu1 %1095 }
 0x2b0   : > { %2499 = vpow2.f32 %v1123_v32  ;;  %v1116_v34 = vsub.f32 %v790_v51, %v1096_v33 }
 0x2b2   : > { %v1125_v35 = vmul.f32 1.442695, %v1116_v34 }
 0x2b3   : > { %v1099_v36 = vpop.xlane.xlu0 %1098 }
 0x2b4   : > { %2501 = vpow2.f32 %v1125_v35  ;;  %v1117_v37 = vsub.f32 %v839_v57, %v1099_v36 }
 0x2b6   : > { %v1127_v38 = vmul.f32 1.442695, %v1117_v37 }
 0x2b7   : > { %v1102_v39 = vpop.xlane.xlu0 %1101 }
 0x2b8   : > { %2503 = vpow2.f32 %v1127_v38  ;;  %v1118_v56 = vsub.f32 %v888_v63, %v1102_v39 }
 0x2ba   : > { %v1129_v40 = vmul.f32 1.442695, %v1118_v56 }
 0x2bb   : > { %v1105_v52 = vpop.xlane.xlu1 %1104 }
 0x2bc   : > { %2505 = vpow2.f32 %v1129_v40  ;;  %v1119_v53 = vsub.f32 %v2925_v5, %v1105_v52 }
 0x2bd   : > { %v2500_v59 = vpop.eup %2499 }
 0x2be   : > { %v1139_v41 = vsel %vm1090_vm4, %v2500_v59, 0.0  ;;  %v1131_v57 = vmul.f32 1.442695, %v1119_v53 }
 0x2bf   : > { %1140 = vadd.xlane.f32.xlu1 %v1139_v41  ;;  %v1108_v43 = vpop.xlane.xlu0 %1107 }
 0x2c0   : > { %v1120_v55 = vsub.f32 %v2929_v12, %v1108_v43  ;;  %2507 = vpow2.f32 %v1131_v57 }
 0x2c1   : > { %v2942_v45 = vpop.eup %2501 }
 0x2c2   : > { %v1142_v42 = vsel %vm1090_vm4, %v2942_v45, 0.0  ;;  %v1133_v60 = vmul.f32 1.442695, %v1120_v55 }
 0x2c3   : > { %1143 = vadd.xlane.f32.xlu0 %v1142_v42  ;;  %v1111_v54 = vpop.xlane.xlu1 %1110  ;;  %v1595_v42 = vld [vmem:[%s3193_s3] sm:$0xf] }
 0x2c4   : > { %v1121_v58 = vsub.f32 %v1035_v17, %v1111_v54  ;;  %2509 = vpow2.f32 %v1133_v60 }
 0x2c5   : > { %v2946_v44 = vpop.eup %2503 }
 0x2c6   : > { %v1145_v46 = vsel %vm1090_vm4, %v2946_v44, 0.0  ;;  %v1135_v61 = vmul.f32 1.442695, %v1121_v58  ;;  %v1597_v58 = vld [vmem:[%s3193_s3 + $0x8] sm:$0xf] }
 0x2c7   : > { %v1114_v47 = vpop.xlane.xlu0 %1113  ;;  %1146 = vadd.xlane.f32.xlu1 %v1145_v46  ;;  %v1300_v8 = vpop.permute.xlu1 %1299  ;;  %v1605_v60 = vpack.c.bf16 %v1597_v58, %v1597_v58 }
 0x2c8   : > { %v1122_v62 = vsub.f32 %v1084_v24, %v1114_v47  ;;  %2511 = vpow2.f32 %v1135_v61  ;;  %v1305_v17 = vsel %vm1207_vm3, %v1300_v8, 0  ;;  %v1603_v47 = vpack.c.bf16 %v1595_v42, %v1595_v42  ;;  %v1598_v61 = vld [vmem:[%s3193_s3 + $0xc] sm:$0xf] }
 0x2c9   : > { %v2950_v48 = vpop.eup %2505 }
 0x2ca   : > { %v1148_v49 = vsel %vm1090_vm4, %v2950_v48, 0.0  ;;  %v1137_v63 = vmul.f32 1.442695, %v1122_v62  ;;  %v1616_v53 = vsel %vm1614_vm5, %v1603_v47, 0 }
 0x2cb   : > { %1149 = vadd.xlane.f32.xlu0 %v1148_v49  ;;  %v1252_v50 = vpop.permute.xlu0 %1251  ;;  %v1348_v10 = vpop.permute.xlu1 %1347 }
 0x2cc   : > { %v1257_v51 = vsel %vm1207_vm3, %v1252_v50, 0  ;;  %2513 = vpow2.f32 %v1137_v63  ;;  %v1353_v22 = vsel %vm1207_vm3, %v1348_v10, 0 }
 0x2cd   : > { %2360 = vmatpush3.bf16.msra.mxu1 %v1257_v51  ;;  %v1596_v51 = vld [vmem:[%s3193_s3 + $0x4] sm:$0xf] }
 0x2ce   : > { %2371 = vmatprep.subr.bf16.mxu1 %v2623_v3  ;;  %v1604_v54 = vpack.c.bf16 %v1596_v51, %v1596_v51 }
 0x2d0   : > { %v1662_v57 = vsel %vm1614_vm5, %v1604_v54, 0 }
 0x2d8   : > { %1443 = vrot.lane.b32.xlu1 %v2849_v9, %s2626_s18  ;;  %v2962_v9 = vpop.eup %2507 }
 0x2d9   : > { %v2964_v0 = vpop.eup %2509 }
 0x2da   : > { %v2968_v1 = vpop.eup %2511  ;;  %v1154_v2 = vsel %vm1090_vm4, %v2964_v0, 0.0 }
 0x2db   : > { %v1157_v4 = vsel %vm1090_vm4, %v2968_v1, 0.0  ;;  %v2974_v5 = vpop.eup %2513 }
 0x2dc   : > { %v1160_v6 = vsel %vm1090_vm4, %v2974_v5, 0.0 }
 0x2e1   : > { %1395 = vrot.lane.b32.xlu0 %v2847_v7, %s2626_s18  ;;  %v1151_v7 = vsel %vm1090_vm4, %v2962_v9, 0.0 }
 0x2fc   : > { %1152 = vadd.xlane.f32.xlu1 %v1151_v7 }
 0x300   : > { %1155 = vadd.xlane.f32.xlu0 %v1154_v2  ;;  %1158 = vadd.xlane.f32.xlu1 %v1157_v4 }
 0x304   : > { %1161 = vadd.xlane.f32.xlu0 %v1160_v6 }
 0x311   : > { %1539 = vrot.lane.b32.xlu1 %v2863_v23, %s2626_s18 }
 0x31a   : > { %1491 = vrot.lane.b32.xlu0 %v2861_v21, %s2626_s18  ;;  %s2535_s18 = sshll.u32 %s2627_s17, 4  ;;  %s2536_s18 = int_to_ptr.vmem [resolvable:$false] %s2535_s18 }
 0x31b   : > { %p2538_p0 = scmp.lt.s32.totalorder %s3107_s10, %s2536_s18 }
 0x348   : > { %v1141_v11 = vpop.xlane.xlu1 %1140 }
 0x349   : > { %2515 = vrcp.f32 %v1141_v11 }
 0x34c   : > { %v1144_v12 = vpop.xlane.xlu0 %1143 }
 0x34d   : > { %2517 = vrcp.f32 %v1144_v12  ;;  %v1600_v12 = vld [vmem:[%s3193_s3 + $0x14] sm:$0xf] }
 0x350   : > { %v1147_v13 = vpop.xlane.xlu1 %1146 }
 0x351   : > { %2519 = vrcp.f32 %v1147_v13 }
 0x354   : > { %v1150_v14 = vpop.xlane.xlu0 %1149  ;;  %v1444_v30 = vpop.permute.xlu1 %1443 }
 0x355   : > { %2521 = vrcp.f32 %v1150_v14  ;;  %v1449_v32 = vsel %vm1207_vm3, %v1444_v30, 0  ;;  %v1602_v30 = vld [vmem:[%s3193_s3 + $0x1c] sm:$0xf] }
 0x356   : > { %v2516_v15 = vpop.eup %2515 }
 0x357   : > { %v1164_v16 = vmul.f32 %v2516_v15, %v2500_v59 }
 0x358   : > { %v1396_v25 = vpop.permute.xlu0 %1395 }
 0x359   : > { %v1194_v23 = vpack.c.bf16 %v1164_v16, %v1164_v16  ;;  %1179 = vst.msk [vmem:[%s2986_s26] sm:$0xff] %vm1090_vm4, %v1164_v16  ;;  %v1401_v28 = vsel %vm1207_vm3, %v1396_v25, 0 }
 0x35a   : > { %v2518_v21 = vpop.eup %2517 }
 0x35b   : > { %2356 = vmatmul.mubr.msk.bf16.vlgmr.msra.gmra.mxu0 %vm1090_vm4, %v1194_v23  ;;  %v1166_v18 = vmul.f32 %v2518_v21, %v2942_v45  ;;  %v1608_v23 = vpack.c.bf16 %v1600_v12, %v1600_v12 }
 0x35c   : > { %2366 = vmatpush3.bf16.msra.mxu0 %v1305_v17  ;;  %2367 = vmatprep.mubr.msk.bf16.mxu0 %vm2624_vm1, %v2623_v3 }
 0x35d   : > { %v1195_v19 = vpack.c.bf16 %v1166_v18, %v1166_v18  ;;  %2377 = vmatprep.subr.bf16.mxu0 %v2623_v3  ;;  %2161 = vst.msk [vmem:[%s2986_s26 + $0x8] sm:$0xff] %vm1090_vm4, %v1166_v18 }
 0x35e   : > { %v2520_v20 = vpop.eup %2519 }
 0x35f   : > { %2362 = vmatmul.mubr.msk.bf16.vlgmr.msra.gmra.mxu1 %vm1090_vm4, %v1195_v19  ;;  %v1168_v24 = vmul.f32 %v2520_v20, %v2946_v44 }
 0x360   : > { %2372 = vmatpush3.bf16.msra.mxu1 %v1353_v22  ;;  %2373 = vmatprep.mubr.msk.bf16.mxu1 %vm2624_vm1, %v2623_v3  ;;  %v1846_v22 = vsel %vm1614_vm5, %v1608_v23, 0 }
 0x361   : > { %v1196_v26 = vpack.c.bf16 %v1168_v24, %v1168_v24  ;;  %2383 = vmatprep.subr.bf16.mxu1 %v2623_v3  ;;  %2162 = vst.msk [vmem:[%s2986_s26 + $0x10] sm:$0xff] %vm1090_vm4, %v1168_v24 }
 0x362   : > { %v2522_v27 = vpop.eup %2521 }
 0x363   : > { %2368 = vmatmul.mubr.msk.bf16.vlgmr.msra.gmra.mxu0 %vm1090_vm4, %v1196_v26  ;;  %v1170_v29 = vmul.f32 %v2522_v27, %v2950_v48 }
 0x364   : > { %2378 = vmatpush3.bf16.msra.mxu0 %v1401_v28  ;;  %2379 = vmatprep.mubr.msk.bf16.mxu0 %vm2624_vm1, %v2623_v3  ;;  %v1601_v28 = vld [vmem:[%s3193_s3 + $0x18] sm:$0xf] }
 0x365   : > { %v1197_v31 = vpack.c.bf16 %v1170_v29, %v1170_v29  ;;  %2389 = vmatprep.subr.bf16.mxu0 %v2623_v3  ;;  %2163 = vst.msk [vmem:[%s2986_s26 + $0x18] sm:$0xff] %vm1090_vm4, %v1170_v29  ;;  %v1609_v29 = vpack.c.bf16 %v1601_v28, %v1601_v28 }
 0x367   : > { %2374 = vmatmul.mubr.msk.bf16.vlgmr.msra.gmra.mxu1 %vm1090_vm4, %v1197_v31 }
 0x368   : > { %2384 = vmatpush3.bf16.msra.mxu1 %v1449_v32  ;;  %2385 = vmatprep.mubr.msk.bf16.mxu1 %vm2624_vm1, %v2623_v3 }
 0x369   : > { %2395 = vmatprep.subr.bf16.mxu1 %v2623_v3 }
 0x385   : > { %v1153_v33 = vpop.xlane.xlu1 %1152 }
 0x386   : > { %2523 = vrcp.f32 %v1153_v33  ;;  %v1892_v33 = vsel %vm1614_vm5, %v1609_v29, 0 }
 0x389   : > { %v1156_v34 = vpop.xlane.xlu0 %1155  ;;  %v1159_v35 = vpop.xlane.xlu1 %1158 }
 0x38a   : > { %2525 = vrcp.f32 %v1156_v34  ;;  %v1610_v34 = vpack.c.bf16 %v1602_v30, %v1602_v30 }
 0x38b   : > { %2527 = vrcp.f32 %v1159_v35 }
 0x38d   : > { %v1162_v36 = vpop.xlane.xlu0 %1161  ;;  %v1540_v43 = vpop.permute.xlu1 %1539 }
 0x38e   : > { %2529 = vrcp.f32 %v1162_v36  ;;  %v1545_v49 = vsel %vm1207_vm3, %v1540_v43, 0 }
 0x391   : > { %v1492_v39 = vpop.permute.xlu0 %1491 }
 0x392   : > { %v1497_v41 = vsel %vm1207_vm3, %v1492_v39, 0  ;;  %v1938_v39 = vsel %vm1614_vm5, %v1610_v34, 0 }
 0x393   : > { %v2524_v37 = vpop.eup %2523 }
 0x394   : > { %v1172_v38 = vmul.f32 %v2524_v37, %v2962_v9  ;;  %v1708_v9 = vsel %vm1614_vm5, %v1605_v60, 0 }
 0x396   : > { %v1198_v56 = vpack.c.bf16 %v1172_v38, %v1172_v38  ;;  %2164 = vst.msk [vmem:[%s2986_s26 + $0x20] sm:$0xff] %vm1090_vm4, %v1172_v38 }
 0x397   : > { %v2526_v40 = vpop.eup %2525 }
 0x398   : > { %v2528_v59 = vpop.eup %2527  ;;  %2380 = vmatmul.mubr.msk.bf16.vlgmr.msra.gmra.mxu0 %vm1090_vm4, %v1198_v56  ;;  %v1174_v45 = vmul.f32 %v2526_v40, %v2964_v0  ;;  %v1606_v0 = vpack.c.bf16 %v1598_v61, %v1598_v61 }
 0x399   : > { %2390 = vmatpush3.bf16.msra.mxu0 %v1497_v41  ;;  %2391 = vmatprep.mubr.msk.bf16.mxu0 %vm2624_vm1, %v2623_v3  ;;  %v1176_v44 = vmul.f32 %v2528_v59, %v2968_v1  ;;  %v1599_v1 = vld [vmem:[%s3193_s3 + $0x10] sm:$0xf] }
 0x39a   : > { %v1199_v46 = vpack.c.bf16 %v1174_v45, %v1174_v45  ;;  %2401 = vmatprep.subr.bf16.mxu0 %v2623_v3  ;;  %2165 = vst.msk [vmem:[%s2986_s26 + $0x28] sm:$0xff] %vm1090_vm4, %v1174_v45  ;;  %v1754_v6 = vsel %vm1614_vm5, %v1606_v0, 0  ;;  %v1607_v8 = vpack.c.bf16 %v1599_v1, %v1599_v1 }
 0x39b   : > { %v2530_v48 = vpop.eup %2529  ;;  %2166 = vst.msk [vmem:[%s2986_s26 + $0x30] sm:$0xff] %vm1090_vm4, %v1176_v44  ;;  %v1200_v52 = vpack.c.bf16 %v1176_v44, %v1176_v44 }
 0x39c   : > { %2386 = vmatmul.mubr.msk.bf16.vlgmr.msra.gmra.mxu1 %vm1090_vm4, %v1199_v46  ;;  %v1178_v50 = vmul.f32 %v2530_v48, %v2974_v5  ;;  %v1800_v16 = vsel %vm1614_vm5, %v1607_v8, 0 }
 0x39d   : > { %2396 = vmatpush3.bf16.msra.mxu1 %v1545_v49  ;;  %2397 = vmatprep.mubr.msk.bf16.mxu1 %vm2624_vm1, %v2623_v3 }
 0x39e   : > { %2407 = vmatprep.subr.bf16.mxu1 %v2623_v3  ;;  %2167 = vst.msk [vmem:[%s2986_s26 + $0x38] sm:$0xff] %vm1090_vm4, %v1178_v50  ;;  %v1201_v55 = vpack.c.bf16 %v1178_v50, %v1178_v50  ;;  %s2537_s26 = scalar_lea.vmem %s2536_s18, 2048 }
 0x39f   : > { %p2539_p1 = scmp.lt.s32.totalorder %s2537_s26, %s2531_s16 }
 0x3a0   : > { %2392 = vmatmul.mubr.msk.bf16.vlgmr.msra.gmra.mxu0 %vm1090_vm4, %v1200_v52 }
 0x3a1   : > { %2402 = vmatpush3.bf16.msra.mxu0 %v1616_v53  ;;  %2403 = vmatprep.mubr.msk.bf16.mxu0 %vm2624_vm1, %v2623_v3  ;;  %p2540_p2 = por %p2539_p1, %p2538_p0 }
 0x3a2   : > { %2413 = vmatprep.subr.bf16.mxu0 %v2623_v3 }
 0x3a3   : > { %p2541_p3 = pnand %p2540_p2, %p2534_p13 }
 0x3a4   : > { %2398 = vmatmul.mubr.msk.bf16.vlgmr.msra.gmra.mxu1 %vm1090_vm4, %v1201_v55 }
 0x3a5   : > { %2408 = vmatpush3.bf16.msra.mxu1 %v1662_v57  ;;  %2409 = vmatprep.mubr.msk.bf16.mxu1 %vm2624_vm1, %v2623_v3 }
 0x3a6   : > { %2419 = vmatprep.subr.bf16.mxu1 %v2623_v3 }
 0x41b   : > { %v1245_v62 = vpop.f32.mrf.mxu0 }
 0x41c   : > { %v1587_v63 = vpack.c.bf16 %v1245_v62, %v1245_v62 }
 0x41d   : > { %v2357_v7 = vpop.f32.mrf.mxu0 }
 0x41e   : > { %2404 = vmatmul.mubr.msk.bf16.vlgmr.msra.gmra.mxu0 %vm700_vm2, %v1587_v63 }
 0x41f   : > { %v1248_v2 = vpop.f32.mrf.mxu0  ;;  %v1293_v4 = vpop.f32.mrf.mxu1  ;;  %2414 = vmatpush3.bf16.msra.mxu0 %v1708_v9  ;;  %2415 = vmatprep.mubr.msk.bf16.mxu0 %vm2624_vm1, %v2623_v3 }
 0x420   : > { %v1588_v5 = vpack.c.bf16 %v1293_v4, %v1293_v4  ;;  %2425 = vmatprep.subr.bf16.mxu0 %v2623_v3 }
 0x421   : > { %v2358_v10 = vpop.f32.mrf.mxu0  ;;  %v2363_v11 = vpop.f32.mrf.mxu1 }
 0x422   : > { %2410 = vmatmul.mubr.msk.bf16.vlgmr.msra.gmra.mxu1 %vm700_vm2, %v1588_v5 }
 0x423   : > { %v1296_v13 = vpop.f32.mrf.mxu1  ;;  %v1341_v14 = vpop.f32.mrf.mxu0  ;;  %2420 = vmatpush3.bf16.msra.mxu1 %v1754_v6  ;;  %2421 = vmatprep.mubr.msk.bf16.mxu1 %vm2624_vm1, %v2623_v3 }
 0x424   : > { %v1589_v15 = vpack.c.bf16 %v1341_v14, %v1341_v14  ;;  %2431 = vmatprep.subr.bf16.mxu1 %v2623_v3 }
 0x425   : > { %v2364_v21 = vpop.f32.mrf.mxu1  ;;  %v2369_v17 = vpop.f32.mrf.mxu0 }
 0x426   : > { %2416 = vmatmul.mubr.msk.bf16.vlgmr.msra.gmra.mxu0 %vm700_vm2, %v1589_v15 }
 0x427   : > { %v1344_v18 = vpop.f32.mrf.mxu0  ;;  %v1389_v19 = vpop.f32.mrf.mxu1  ;;  %2426 = vmatpush3.bf16.msra.mxu0 %v1800_v16  ;;  %2427 = vmatprep.mubr.msk.bf16.mxu0 %vm2624_vm1, %v2623_v3 }
 0x428   : > { %v1590_v20 = vpack.c.bf16 %v1389_v19, %v1389_v19  ;;  %2437 = vmatprep.subr.bf16.mxu0 %v2623_v3 }
 0x429   : > { %v2370_v24 = vpop.f32.mrf.mxu0  ;;  %v2375_v25 = vpop.f32.mrf.mxu1 }
 0x42a   : > { %2422 = vmatmul.mubr.msk.bf16.vlgmr.msra.gmra.mxu1 %vm700_vm2, %v1590_v20 }
 0x42b   : > { %v1392_v26 = vpop.f32.mrf.mxu1  ;;  %2432 = vmatpush3.bf16.msra.mxu1 %v1846_v22  ;;  %2433 = vmatprep.mubr.msk.bf16.mxu1 %vm2624_vm1, %v2623_v3 }
 0x42c   : > { %2443 = vmatprep.subr.bf16.mxu1 %v2623_v3 }
 0x42d   : > { %v2376_v27 = vpop.f32.mrf.mxu1 }
 0x458   : > { %v1437_v31 = vpop.f32.mrf.mxu0 }
 0x459   : > { %v1591_v32 = vpack.c.bf16 %v1437_v31, %v1437_v31 }
 0x45a   : > { %v2381_v35 = vpop.f32.mrf.mxu0 }
 0x45b   : > { %2428 = vmatmul.mubr.msk.bf16.vlgmr.msra.gmra.mxu0 %vm700_vm2, %v1591_v32 }
 0x45c   : > { %v1440_v36 = vpop.f32.mrf.mxu0  ;;  %v1485_v37 = vpop.f32.mrf.mxu1  ;;  %2438 = vmatpush3.bf16.msra.mxu0 %v1892_v33  ;;  %2439 = vmatprep.mubr.msk.bf16.mxu0 %vm2624_vm1, %v2623_v3 }
 0x45d   : > { %v1592_v38 = vpack.c.bf16 %v1485_v37, %v1485_v37 }
 0x45e   : > { %v2382_v56 = vpop.f32.mrf.mxu0  ;;  %v2387_v40 = vpop.f32.mrf.mxu1 }
 0x45f   : > { %2434 = vmatmul.mubr.msk.bf16.vlgmr.msra.gmra.mxu1 %vm700_vm2, %v1592_v38 }
 0x460   : > { %v1488_v59 = vpop.f32.mrf.mxu1  ;;  %v1533_v41 = vpop.f32.mrf.mxu0  ;;  %2444 = vmatpush3.bf16.msra.mxu1 %v1938_v39  ;;  %2445 = vmatprep.mubr.msk.bf16.mxu1 %vm2624_vm1, %v2623_v3 }
 0x461   : > { %v1593_v45 = vpack.c.bf16 %v1533_v41, %v1533_v41 }
 0x462   : > { %v2388_v42 = vpop.f32.mrf.mxu1  ;;  %v2393_v43 = vpop.f32.mrf.mxu0 }
 0x463   : > { %2440 = vmatmul.mubr.msk.bf16.vlgmr.msra.gmra.mxu0 %vm700_vm2, %v1593_v45 }
 0x464   : > { %v1536_v44 = vpop.f32.mrf.mxu0  ;;  %v1581_v46 = vpop.f32.mrf.mxu1 }
 0x465   : > { %v1594_v47 = vpack.c.bf16 %v1581_v46, %v1581_v46 }
 0x466   : > { %v2394_v48 = vpop.f32.mrf.mxu0  ;;  %v2399_v49 = vpop.f32.mrf.mxu1 }
 0x467   : > { %2446 = vmatmul.mubr.msk.bf16.vlgmr.msra.gmra.mxu1 %vm700_vm2, %v1594_v47 }
 0x468   : > { %v1584_v50 = vpop.f32.mrf.mxu1 }
 0x46a   : > { %v2400_v51 = vpop.f32.mrf.mxu1 }
 0x46b   : > { %2544 = shalt.err (!%p2541_p3)
}
 0x46c   : > { %s2545_s20 = scalar_lea.hbm %s3112_s14, 1024  ;;  %s2549_s9 = scalar_lea.hbm %s3196_s6, 2048 }
 0x46d   : > { %p2546_p4 = scmp.ne.s32.totalorder %s3112_s14, %s2545_s20  ;;  %p2550_p9 = scmp.lt.s32.totalorder %s3112_s14, %s3196_s6 }
 0x46e   : > { %p2551_p10 = scmp.lt.s32.totalorder %s2549_s9, %s2545_s20 }
 0x46f   : > { %p2547_p7 = pnand %p2546_p4, %p2704_p5 }
 0x470   : > { %p2552_p11 = por %p2551_p10, %p2550_p9 }
 0x471   : > { %p2548_p8 = pneg %p2547_p7 }
 0x473   : > { %p2553_p12 = pnand %p2552_p11, %p2548_p8 }
 0x475   : > { %2556 = shalt.err (!%p2553_p12)
}
 0x476   : > { %s2628_s13 = smov 128   ;;  %s2629_s16 = smov 8   ;;  %v2184_v32 = vld [vmem:[%s3194_s4] ss:$0 sm:$0xff] }
 0x477   : > { %2450 = dma.vmem_to_hbm [thread:$0]  (%p2704_p5), %s3107_s10, 1024, %s3112_s14, %s2010_s15, %s2628_s13, %s2628_s13, %s2629_s16  }
 0x478   : > { %s2134_s10 = sshll.u32 %s2983_s19, 3  ;;  %s2187_s17 = sshll.u32 %s2687_s25, 7 }
 0x479   : > { %s246_s18 = scalar_lea.vmem [#allocation2], %s2134_s10  ;;  %s3153_s29 = scalar_lea.hbm %s3195_s5, %s2187_s17 }
 0x47a   : > { %s2023_s26 = sshll.u32 %s246_s18, 4  ;;  %s2005_s9 = scalar_lea.sflag [#allocation3], %s2983_s19  ;;  %s2024_s26 = int_to_ptr.vmem [resolvable:$true] %s2023_s26 }
 0x47b   : > { %s2557_s11 = scalar_lea.vmem %s2024_s26, 128  ;;  %s2630_s25 = smov [#allocation2]  }
 0x47c   : > { %p2558_p13 = scmp.ne.s32.totalorder %s2024_s26, %s2557_s11  ;;  %s2561_s12 = sshll.u32 %s2630_s25, 4  ;;  %s2562_s12 = int_to_ptr.vmem [resolvable:$false] %s2561_s12 }
 0x47d   : > { %s2563_s13 = scalar_lea.vmem %s2562_s12, 256  ;;  %p2564_p2 = scmp.lt.s32.totalorder %s2024_s26, %s2562_s12 }
 0x47e   : > { %p2559_p0 = pnand %p2558_p13, %p2704_p5  ;;  %p2565_p3 = scmp.lt.s32.totalorder %s2563_s13, %s2557_s11 }
 0x480   : > { %p2560_p1 = pneg %p2559_p0  ;;  %p2566_p4 = por %p2565_p3, %p2564_p2 }
 0x482   : > { %p2567_p7 = pnand %p2566_p4, %p2560_p1 }
 0x4de   : > { %v1652_v3 = vpop.f32.mrf.mxu0 }
 0x4df   : > { %v1980_v6 = vsel %vm341_vm0, %v1652_v3, 0.0 }
 0x4e0   : > { %v2405_v52 = vpop.f32.mrf.mxu0 }
 0x4e2   : > { %v1655_v53 = vpop.f32.mrf.mxu0  ;;  %v1698_v54 = vpop.f32.mrf.mxu1 }
 0x4e3   : > { %v1981_v4 = vsel %vm341_vm0, %v1698_v54, 0.0 }
 0x4e4   : > { %v2406_v55 = vpop.f32.mrf.mxu0  ;;  %v2411_v57 = vpop.f32.mrf.mxu1  ;;  %v1982_v10 = vadd.f32 %v1981_v4, %v1980_v6 }
 0x4e6   : > { %v1701_v58 = vpop.f32.mrf.mxu1  ;;  %v1744_v60 = vpop.f32.mrf.mxu0 }
 0x4e7   : > { %v1983_v8 = vsel %vm341_vm0, %v1744_v60, 0.0 }
 0x4e8   : > { %v2412_v61 = vpop.f32.mrf.mxu1  ;;  %v2417_v62 = vpop.f32.mrf.mxu0  ;;  %v1984_v13 = vadd.f32 %v1983_v8, %v1982_v10 }
 0x4ea   : > { %v1747_v63 = vpop.f32.mrf.mxu0  ;;  %v1790_v9 = vpop.f32.mrf.mxu1 }
 0x4eb   : > { %v1985_v12 = vsel %vm341_vm0, %v1790_v9, 0.0 }
 0x4ec   : > { %v2418_v0 = vpop.f32.mrf.mxu0  ;;  %v2423_v7 = vpop.f32.mrf.mxu1  ;;  %v1986_v23 = vadd.f32 %v1985_v12, %v1984_v13 }
 0x4ee   : > { %v1793_v1 = vpop.f32.mrf.mxu1 }
 0x4f0   : > { %v2424_v2 = vpop.f32.mrf.mxu1 }
 0x51b   : > { %v1836_v5 = vpop.f32.mrf.mxu0 }
 0x51c   : > { %v1987_v16 = vsel %vm341_vm0, %v1836_v5, 0.0 }
 0x51d   : > { %v2429_v11 = vpop.f32.mrf.mxu0  ;;  %v1988_v19 = vadd.f32 %v1987_v16, %v1986_v23 }
 0x51f   : > { %v1839_v14 = vpop.f32.mrf.mxu0  ;;  %v1882_v15 = vpop.f32.mrf.mxu1 }
 0x520   : > { %v1989_v18 = vsel %vm341_vm0, %v1882_v15, 0.0 }
 0x521   : > { %v2430_v21 = vpop.f32.mrf.mxu0  ;;  %v2435_v17 = vpop.f32.mrf.mxu1  ;;  %v1990_v25 = vadd.f32 %v1989_v18, %v1988_v19 }
 0x523   : > { %v1885_v20 = vpop.f32.mrf.mxu1  ;;  %v1928_v22 = vpop.f32.mrf.mxu0 }
 0x524   : > { %v1991_v24 = vsel %vm341_vm0, %v1928_v22, 0.0 }
 0x525   : > { %v2436_v26 = vpop.f32.mrf.mxu1  ;;  %v2441_v27 = vpop.f32.mrf.mxu0  ;;  %v1992_v28 = vadd.f32 %v1991_v24, %v1990_v25 }
 0x527   : > { %v1931_v29 = vpop.f32.mrf.mxu0  ;;  %v1974_v30 = vpop.f32.mrf.mxu1 }
 0x528   : > { %v1993_v31 = vsel %vm341_vm0, %v1974_v30, 0.0 }
 0x529   : > { %v1994_v33 = vadd.f32 %v1993_v31, %v1992_v28  ;;  %v2442_v34 = vpop.f32.mrf.mxu0  ;;  %v2447_v35 = vpop.f32.mrf.mxu1 }
 0x52b   : > { %v2002_v36 = vadd.f32 %v2184_v32, %v1994_v33  ;;  %v1977_v37 = vpop.f32.mrf.mxu1 }
 0x52d   : > { %v2448_v38 = vpop.f32.mrf.mxu1  ;;  %2003 = vst.msk [vmem:[%s246_s18] sm:$0xff] %vm341_vm0, %v2002_v36 }
 0x52e   : > { %2570 = shalt.err (!%p2567_p7)
}
 0x52f   : > { %s2571_s16 = scalar_lea.hbm %s3153_s29, 128  ;;  %s2575_s14 = scalar_lea.hbm %s3195_s5, 256 }
 0x530   : > { %p2572_p8 = scmp.ne.s32.totalorder %s3153_s29, %s2571_s16  ;;  %p2576_p11 = scmp.lt.s32.totalorder %s3153_s29, %s3195_s5 }
 0x531   : > { %p2577_p12 = scmp.lt.s32.totalorder %s2575_s14, %s2571_s16 }
 0x532   : > { %p2573_p9 = pnand %p2572_p8, %p2704_p5 }
 0x533   : > { %p2578_p13 = por %p2577_p12, %p2576_p11 }
 0x534   : > { %p2574_p10 = pneg %p2573_p9 }
 0x536   : > { %p2579_p0 = pnand %p2578_p13, %p2574_p10 }
 0x538   : > { %2582 = shalt.err (!%p2579_p0)
}
 0x539   : > { %2449 = dma.vmem_to_hbm [thread:$0]  (%p2704_p5), %s2024_s26, 128, %s3153_s29, %s2005_s9  }
 0x53a PF: > { %p2460_p1 = scmp.ge.s32.totalorder %s2621_s24, 2  ;;  %s2051_s18 = sand.u32 1, %s2609_s21  }
 0x53b   : > { %s2052_s20 = scalar_lea.sflag [#allocation3], %s2051_s18 }
 0x53c   : > { %p2454_p2 = pnand %p2460_p1, %p2708_p6 }
 0x53e   : > { %p2455_p3 = pneg %p2454_p2 }
 0x540   : > { %2600 = dma.done.wait (%p2455_p3), %s2052_s20, 128  }
 0x541   : > { %2602 = vsyncadd (%p2455_p3), %s2052_s20, 4294967168  ;;  %s2061_s28 = scalar_lea.sflag [#allocation5], %s2051_s18 }
 0x542   : > { %2604 = dma.done.wait (%p2455_p3), %s2061_s28, 1024  }
 0x543   : > { %2606 = vsyncadd (%p2455_p3), %s2061_s28, 4294966272  ;;  %p20_p5 = scmp.ge.s32.totalorder %s2691_s27, 4   ;;  %s3199_s21 = smov %s2613_s22 }
 0x544   : > { %s3200_s22 = smov %s2617_s23  ;;  %s3201_s23 = smov %s2702_s30 }
 0x545   : > { %s3202_s24 = smov %s2691_s27  ;;  %22 = sbr.rel (!%p20_p5) target bundleno = 5 (0x5), region = 99 }
 0x54a   :  { %2066 = vsyncpa [#allocation3], 1 }
 0x54b   :  { %2068 = vsyncpa [#allocation3 + $0x1], 1 }
 0x54c   :  { %2069 = vsyncpa [#allocation5], 1 }
 0x54d   :  { %2071 = vsyncpa [#allocation5 + $0x1], 1 }

// kernel: tpu_custom_call.1
= control target key start
LH: loop header
LB: loop body
LE: loop exit
PB: predicated region body
PF: predicated region fallthrough
CT: control target
= control target key end

     0   :  { %12 = vsyncpa [#allocation3], 0  ;;  %s3190_s0 = inlined_call_operand.vmem [shape: f32[2,8,32], index: 0, kind: input, shape index: {}]   ;;  %s3191_s1 = inlined_call_operand.vmem [shape: f32[8,12,32], index: 1, kind: input, shape index: {}]   ;;  %s3192_s2 = inlined_call_operand.vmem [shape: f32[8,1,12], index: 2, kind: input, shape index: {}]   ;;  %s3193_s3 = inlined_call_operand.vmem [shape: f32[8,4,32], index: 3, kind: input, shape index: {}]   ;;  %s3194_s4 = inlined_call_operand.vmem [shape: f32[1,32], index: 4, kind: input, shape index: {}]   ;;  %s3195_s5 = inlined_call_operand.hbm [shape: f32[2,8,32], index: 5, kind: output, shape index: {0}]   ;;  %s3196_s6 = inlined_call_operand.hbm [shape: f32[2,8,8,8], index: 6, kind: output, shape index: {1}]  }
   0x1   :  { %14 = vsyncpa [#allocation3 + $0x1], 0 }
   0x2   :  { %15 = vsyncpa [#allocation5], 0 }
   0x3   :  { %17 = vsyncpa [#allocation5 + $0x1], 0  ;;  %s2666_s21 = smov 0   ;;  %s2668_s22 = smov 0  }
   0x4   :  { %s2670_s23 = smov 0   ;;  %s2672_s24 = smov 0  }
   0x5 LB: > { %s2687_s25 = sadd.s32 4294967295, %s2621_s24   ;;  %s2130_s26 = sadd.s32 4294967294, %s2621_s24   ;;  %s2621_s24 = sphi %s2672_s24, %s3202_s24   ;;  %s2617_s23 = sphi %s2670_s23, %s3201_s23   ;;  %s2613_s22 = sphi %s2668_s22, %s3200_s22   ;;  %s2609_s21 = sphi %s2666_s21, %s3199_s21  }
   0x6   : > { %s2691_s27 = sadd.s32 1, %s2621_s24   ;;  %s140_s28 = sadd.s32 1, %s2617_s23 }
   0x7   : > { %s137_s29 = ssub.s32 %s2621_s24, %s2691_s27  ;;  %p150_p0 = scmp.ne.s32.totalorder %s2617_s23, %s2613_s22 }
   0x8   : > { %p138_p1 = scmp.eq.s32.totalorder %s137_s29, 0  ;;  %p151_p2 = scmp.eq.s32.totalorder %s2687_s25, 1 }
   0x9   : > { %p156_p3 = scmp.ne.s32.totalorder %s2613_s22, %s2609_s21  ;;  %p157_p4 = scmp.eq.s32.totalorder %s2130_s26, 1 }
   0xa   : > { %s2702_s30 = scalar_select %p138_p1, %s2617_s23, %s140_s28  }
   0xb   : > { %p2704_p5 = por %p151_p2, %p150_p0  ;;  %p2708_p6 = por %p157_p4, %p156_p3 }
   0xc   : > { %p2133_p7 = scmp.ge.s32.totalorder %s2621_s24, 1  ;;  %p220_p8 = scmp.lt.s32.totalorder %s2621_s24, 3 }
   0xe   : > { %p221_p9 = pnand %p2133_p7, %p220_p8 }
   0xf   : > { %p254_p10 = scmp.lt.s32.totalorder (!%p221_p9), %s2687_s25, 1  ;;  %s2625_s20 = smov (!%p221_p9), 124  }
  0x10   : > { %224 = sbr.rel (%p221_p9) target bundleno = 1338 (0x53a), region = 40  ;;  %s2626_s18 = smov (!%p221_p9), 120  }
  0x11   : > { %s2983_s19 = sand.u32 (!%p221_p9), 1, %s2613_s22   ;;  %s2627_s17 = smov (!%p221_p9), [#allocation4]  }
  0x12   : > { %s2010_s15 = scalar_lea.sflag (!%p221_p9), [#allocation5], %s2983_s19 }
  0x15   : > { %v261_v0 = vld [vmem:[%s3191_s1] sm:$0xff]  ;;  %v262_v1 = vld [vmem:[%s3191_s1 + $0x8] sm:$0xf]  ;;  %vm341_vm0 = vcmask 261120   ;;  %v263_v2 = vld [vmem:[%s3191_s1 + $0x10] sm:$0xff]  ;;  %v2623_v3 = vmov 0.0  }
  0x16   : > { %2257 = vmatprep.subr.bf16.mxu0 %v2623_v3  ;;  %2263 = vmatprep.subr.bf16.mxu1 %v2623_v3  ;;  %v277_v4 = vpack.c.bf16 %v262_v1, %v261_v0  ;;  %v264_v5 = vld [vmem:[%s3191_s1 + $0x18] sm:$0xf]  ;;  %vm2624_vm1 = vmmov 0   ;;  %v265_v7 = vld [vmem:[%s3191_s1 + $0x20] sm:$0xff]  ;;  %v266_v8 = vld [vmem:[%s3191_s1 + $0x28] sm:$0xf] }
  0x17   : > { %v278_v6 = vpack.c.bf16 %v264_v5, %v263_v2  ;;  %2259 = vmatprep.mubr.msk.bf16.mxu0 %vm2624_vm1, %v2623_v3  ;;  %2265 = vmatprep.mubr.msk.bf16.mxu1 %vm2624_vm1, %v2623_v3  ;;  %s255_s26 = scalar_select %p254_p10, %s2687_s25, 1  ;;  %v267_v10 = vld [vmem:[%s3191_s1 + $0x30] sm:$0xff]  ;;  %v268_v11 = vld [vmem:[%s3191_s1 + $0x38] sm:$0xf]  ;;  %v279_v13 = vpack.c.bf16 %v266_v8, %v265_v7  ;;  %v269_v19 = vld [vmem:[%s3191_s1 + $0x40] sm:$0xff]  ;;  %vm700_vm2 = vcmask 31744  }
  0x18   : > { %v346_v9 = vsel %vm341_vm0, %v277_v4, 0  ;;  %v280_v14 = vpack.c.bf16 %v268_v11, %v267_v10  ;;  %v270_v20 = vld [vmem:[%s3191_s1 + $0x48] sm:$0xf]  ;;  %v271_v21 = vld [vmem:[%s3191_s1 + $0x50] sm:$0xff]  ;;  %v272_v22 = vld [vmem:[%s3191_s1 + $0x58] sm:$0xf] }
  0x19   : > { %2258 = vmatpush3.bf16.xpose.msra.mxu0 %v346_v9  ;;  %v389_v12 = vsel %vm341_vm0, %v278_v6, 0  ;;  %s2136_s11 = sshll.u32 %s255_s26, 3  ;;  %v432_v17 = vsel %vm341_vm0, %v279_v13, 0  ;;  %v281_v23 = vpack.c.bf16 %v270_v20, %v269_v19  ;;  %v282_v24 = vpack.c.bf16 %v272_v22, %v271_v21  ;;  %v273_v27 = vld [vmem:[%s3191_s1 + $0x60] sm:$0xff]  ;;  %v274_v28 = vld [vmem:[%s3191_s1 + $0x68] sm:$0xf] }
  0x1a   : > { %2264 = vmatpush3.bf16.xpose.msra.mxu1 %v389_v12  ;;  %2269 = vmatprep.subr.bf16.mxu0 %v2623_v3  ;;  %s257_s14 = scalar_lea.vmem %s3190_s0, %s2136_s11  ;;  %v475_v18 = vsel %vm341_vm0, %v280_v14, 0  ;;  %v275_v29 = vld [vmem:[%s3191_s1 + $0x70] sm:$0xff]  ;;  %v276_v30 = vld [vmem:[%s3191_s1 + $0x78] sm:$0xf]  ;;  %v283_v31 = vpack.c.bf16 %v274_v28, %v273_v27  ;;  %v2137_v35 = vld [vmem:[%s3192_s2] ss:$0 sm:$0xff] }
  0x1b   : > { %2275 = vmatprep.subr.bf16.mxu1 %v2623_v3  ;;  %v259_v15 = vld [vmem:[%s257_s14] sm:$0xff]  ;;  %v518_v25 = vsel %vm341_vm0, %v281_v23, 0  ;;  %v561_v26 = vsel %vm341_vm0, %v282_v24, 0  ;;  %v284_v32 = vpack.c.bf16 %v276_v30, %v275_v29  ;;  %vm1207_vm3 = vcmask 1043456   ;;  %s2192_s11 = sshll.u32 %s2687_s25, 10 }
  0x1c   : > { %v260_v16 = vpack.c.bf16 %v259_v15, %v259_v15  ;;  %v604_v33 = vsel %vm341_vm0, %v283_v31, 0  ;;  %v2138_v36 = vld [vmem:[%s3192_s2 + $0x1] ss:$0 sm:$0xff]  ;;  %v2139_v48 = vld [vmem:[%s3192_s2 + $0x2] ss:$0 sm:$0xff]  ;;  %vm1090_vm4 = vcmask 64512   ;;  %s3112_s14 = scalar_lea.hbm %s3196_s6, %s2192_s11 }
  0x1d   : > { %v647_v34 = vsel %vm341_vm0, %v284_v32, 0  ;;  %v2140_v50 = vld [vmem:[%s3192_s2 + $0x3] ss:$0 sm:$0xff]  ;;  %v2141_v62 = vld [vmem:[%s3192_s2 + $0x4] ss:$0 sm:$0xff]  ;;  %vm1614_vm5 = vcmask 1041408  }
  0x1e   : > { %v2142_v0 = vld [vmem:[%s3192_s2 + $0x5] ss:$0 sm:$0xff]  ;;  %v2143_v13 = vld [vmem:[%s3192_s2 + $0x6] ss:$0 sm:$0xff]  ;;  %v2144_v15 = vld [vmem:[%s3192_s2 + $0x7] ss:$0 sm:$0xff] }
  0x20   : > { %2260 = vmatmul.mubr.msk.bf16.vlgmr.msra.gmra.mxu0 %vm341_vm0, %v260_v16 }
  0x21   : > { %2266 = vmatmul.mubr.msk.bf16.vlgmr.msra.gmra.mxu1 %vm341_vm0, %v260_v16  ;;  %2270 = vmatpush3.bf16.xpose.msra.mxu0 %v432_v17 }
  0x22   : > { %2276 = vmatpush3.bf16.xpose.msra.mxu1 %v475_v18  ;;  %2271 = vmatprep.mubr.msk.bf16.mxu0 %vm2624_vm1, %v2623_v3 }
  0x23   : > { %2277 = vmatprep.mubr.msk.bf16.mxu1 %vm2624_vm1, %v2623_v3  ;;  %2281 = vmatprep.subr.bf16.mxu0 %v2623_v3 }
  0x24   : > { %2287 = vmatprep.subr.bf16.mxu1 %v2623_v3 }
  0x28   : > { %2272 = vmatmul.mubr.msk.bf16.vlgmr.msra.gmra.mxu0 %vm341_vm0, %v260_v16 }
  0x29   : > { %2278 = vmatmul.mubr.msk.bf16.vlgmr.msra.gmra.mxu1 %vm341_vm0, %v260_v16  ;;  %2282 = vmatpush3.bf16.xpose.msra.mxu0 %v518_v25 }
  0x2a   : > { %2288 = vmatpush3.bf16.xpose.msra.mxu1 %v561_v26  ;;  %2283 = vmatprep.mubr.msk.bf16.mxu0 %vm2624_vm1, %v2623_v3 }
  0x2b   : > { %2289 = vmatprep.mubr.msk.bf16.mxu1 %vm2624_vm1, %v2623_v3  ;;  %2293 = vmatprep.subr.bf16.mxu0 %v2623_v3 }
  0x2c   : > { %2299 = vmatprep.subr.bf16.mxu1 %v2623_v3 }
  0x30   : > { %2284 = vmatmul.mubr.msk.bf16.vlgmr.msra.gmra.mxu0 %vm341_vm0, %v260_v16 }
  0x31   : > { %2290 = vmatmul.mubr.msk.bf16.vlgmr.msra.gmra.mxu1 %vm341_vm0, %v260_v16  ;;  %2294 = vmatpush3.bf16.xpose.msra.mxu0 %v604_v33 }
  0x32   : > { %2300 = vmatpush3.bf16.xpose.msra.mxu1 %v647_v34  ;;  %2295 = vmatprep.mubr.msk.bf16.mxu0 %vm2624_vm1, %v2623_v3 }
  0x33   : > { %2301 = vmatprep.mubr.msk.bf16.mxu1 %vm2624_vm1, %v2623_v3  ;;  %2305 = vmatprep.subr.bf16.mxu0 %v2623_v3 }
  0x34   : > { %2311 = vmatprep.subr.bf16.mxu1 %v2623_v3 }
  0x38   : > { %2296 = vmatmul.mubr.msk.bf16.vlgmr.msra.gmra.mxu0 %vm341_vm0, %v260_v16 }
  0x39   : > { %2302 = vmatmul.mubr.msk.bf16.vlgmr.msra.gmra.mxu1 %vm341_vm0, %v260_v16  ;;  %2307 = vmatprep.mubr.msk.bf16.mxu0 %vm2624_vm1, %v2623_v3 }
  0x3a   : > { %2313 = vmatprep.mubr.msk.bf16.mxu1 %vm2624_vm1, %v2623_v3 }
  0xe0   : > { %v382_v37 = vpop.f32.mrf.mxu0 }
  0xe1   : > { %v383_v38 = vadd.f32 %v2137_v35, %v382_v37  ;;  %v425_v39 = vpop.f32.mrf.mxu1 }
  0xe2   : > { %v426_v40 = vadd.f32 %v2138_v36, %v425_v39  ;;  %v2261_v41 = vpop.f32.mrf.mxu0 }
  0xe3   : > { %v2819_v42 = vpack.c.bf16 %v383_v38, %v383_v38  ;;  %v2267_v43 = vpop.f32.mrf.mxu1 }
  0xe4   : > { %v385_v44 = vpop.f32.mrf.mxu0  ;;  %v2821_v45 = vpack.c.bf16 %v426_v40, %v426_v40 }
  0xe5   : > { %v428_v46 = vpop.f32.mrf.mxu1  ;;  %698 = vrot.lane.b32.xlu0 %v2819_v42, %s2625_s20 }
  0xe6   : > { %v2262_v47 = vpop.f32.mrf.mxu0 }
  0xe7   : > { %v2268_v49 = vpop.f32.mrf.mxu1 }
  0xe8   : > { %v468_v51 = vpop.f32.mrf.mxu0 }
  0xe9   : > { %v469_v52 = vadd.f32 %v2139_v48, %v468_v51  ;;  %v511_v53 = vpop.f32.mrf.mxu1  ;;  %748 = vrot.lane.b32.xlu0 %v2821_v45, %s2625_s20 }
  0xea   : > { %v512_v54 = vadd.f32 %v2140_v50, %v511_v53  ;;  %v2273_v55 = vpop.f32.mrf.mxu0 }
  0xeb   : > { %v2833_v56 = vpack.c.bf16 %v469_v52, %v469_v52  ;;  %v2279_v57 = vpop.f32.mrf.mxu1 }
  0xec   : > { %v471_v58 = vpop.f32.mrf.mxu0  ;;  %v2835_v59 = vpack.c.bf16 %v512_v54, %v512_v54 }
  0xed   : > { %v514_v60 = vpop.f32.mrf.mxu1  ;;  %797 = vrot.lane.b32.xlu1 %v2833_v56, %s2625_s20 }
  0xee   : > { %v2274_v61 = vpop.f32.mrf.mxu0 }
  0xef   : > { %v2280_v63 = vpop.f32.mrf.mxu1 }
  0xf0   : > { %v554_v1 = vpop.f32.mrf.mxu0 }
  0xf1   : > { %v555_v2 = vadd.f32 %v2141_v62, %v554_v1  ;;  %v597_v4 = vpop.f32.mrf.mxu1  ;;  %846 = vrot.lane.b32.xlu1 %v2835_v59, %s2625_s20 }
  0xf2   : > { %v598_v5 = vadd.f32 %v2142_v0, %v597_v4  ;;  %v2285_v6 = vpop.f32.mrf.mxu0 }
  0xf3   : > { %v2847_v7 = vpack.c.bf16 %v555_v2, %v555_v2  ;;  %v2291_v8 = vpop.f32.mrf.mxu1 }
  0xf4   : > { %v2849_v9 = vpack.c.bf16 %v598_v5, %v598_v5  ;;  %v557_v10 = vpop.f32.mrf.mxu0 }
  0xf5   : > { %v600_v11 = vpop.f32.mrf.mxu1  ;;  %895 = vrot.lane.b32.xlu0 %v2847_v7, %s2625_s20 }
  0xf6   : > { %v2286_v12 = vpop.f32.mrf.mxu0  ;;  %944 = vrot.lane.b32.xlu1 %v2849_v9, %s2625_s20 }
  0xf7   : > { %v2292_v14 = vpop.f32.mrf.mxu1 }
  0xf8   : > { %v640_v16 = vpop.f32.mrf.mxu0 }
  0xf9   : > { %v641_v17 = vadd.f32 %v2143_v13, %v640_v16  ;;  %v683_v18 = vpop.f32.mrf.mxu1 }
  0xfa   : > { %v684_v19 = vadd.f32 %v2144_v15, %v683_v18  ;;  %v2297_v20 = vpop.f32.mrf.mxu0 }
  0xfb   : > { %v2861_v21 = vpack.c.bf16 %v641_v17, %v641_v17  ;;  %v2303_v22 = vpop.f32.mrf.mxu1 }
  0xfc   : > { %v2863_v23 = vpack.c.bf16 %v684_v19, %v684_v19  ;;  %v643_v24 = vpop.f32.mrf.mxu0 }
  0xfd   : > { %993 = vrot.lane.b32.xlu0 %v2861_v21, %s2625_s20  ;;  %v686_v25 = vpop.f32.mrf.mxu1 }
  0xfe   : > { %1042 = vrot.lane.b32.xlu1 %v2863_v23, %s2625_s20  ;;  %v2298_v26 = vpop.f32.mrf.mxu0  ;;  %s2135_s20 = sshll.u32 %s2983_s19, 6 }
  0xff   : > { %v2304_v27 = vpop.f32.mrf.mxu1  ;;  %s2986_s26 = scalar_lea.vmem [#allocation4], %s2135_s20 }
 0x100   : > { %s2036_s10 = sshll.u32 %s2986_s26, 4  ;;  %s3107_s10 = int_to_ptr.vmem [resolvable:$true] %s2036_s10 }
 0x101   : > { %s2531_s16 = scalar_lea.vmem %s3107_s10, 1024 }
 0x102   : > { %1202 = vrot.lane.b32.xlu1 %v2819_v42, %s2626_s18  ;;  %p2532_p11 = scmp.ne.s32.totalorder %s3107_s10, %s2531_s16 }
 0x104   : > { %p2533_p12 = pnand %p2532_p11, %p2704_p5 }
 0x106   : > { %p2534_p13 = pneg %p2533_p12 }
 0x157   : > { %v699_v28 = vpop.permute.xlu0 %698 }
 0x158   : > { %v705_v29 = vsel %vm700_vm2, %v699_v28, 0 }
 0x159   : > { %2306 = vmatpush3.bf16.xpose.msra.mxu0 %v705_v29 }
 0x15a   : > { %2317 = vmatprep.subr.bf16.mxu0 %v2623_v3 }
 0x15b   : > { %v749_v30 = vpop.permute.xlu0 %748 }
 0x15c   : > { %v754_v31 = vsel %vm700_vm2, %v749_v30, 0 }
 0x15d   : > { %2312 = vmatpush3.bf16.xpose.msra.mxu1 %v754_v31 }
 0x15e   : > { %2323 = vmatprep.subr.bf16.mxu1 %v2623_v3 }
 0x15f   : > { %v798_v32 = vpop.permute.xlu1 %797 }
 0x160   : > { %v803_v33 = vsel %vm700_vm2, %v798_v32, 0  ;;  %2308 = vmatmul.mubr.msk.bf16.vlgmr.msra.gmra.mxu0 %vm700_vm2, %v2819_v42 }
 0x161   : > { %2318 = vmatpush3.bf16.xpose.msra.mxu0 %v803_v33  ;;  %2319 = vmatprep.mubr.msk.bf16.mxu0 %vm2624_vm1, %v2623_v3 }
 0x162   : > { %2329 = vmatprep.subr.bf16.mxu0 %v2623_v3 }
 0x163   : > { %v847_v34 = vpop.permute.xlu1 %846 }
 0x164   : > { %v852_v35 = vsel %vm700_vm2, %v847_v34, 0  ;;  %2314 = vmatmul.mubr.msk.bf16.vlgmr.msra.gmra.mxu1 %vm700_vm2, %v2821_v45 }
 0x165   : > { %2324 = vmatpush3.bf16.xpose.msra.mxu1 %v852_v35  ;;  %2325 = vmatprep.mubr.msk.bf16.mxu1 %vm2624_vm1, %v2623_v3 }
 0x166   : > { %2335 = vmatprep.subr.bf16.mxu1 %v2623_v3 }
 0x167   : > { %v896_v36 = vpop.permute.xlu0 %895 }
 0x168   : > { %v901_v37 = vsel %vm700_vm2, %v896_v36, 0  ;;  %2320 = vmatmul.mubr.msk.bf16.vlgmr.msra.gmra.mxu0 %vm700_vm2, %v2833_v56  ;;  %v945_v38 = vpop.permute.xlu1 %944 }
 0x169   : > { %2330 = vmatpush3.bf16.xpose.msra.mxu0 %v901_v37  ;;  %2331 = vmatprep.mubr.msk.bf16.mxu0 %vm2624_vm1, %v2623_v3  ;;  %v950_v39 = vsel %vm700_vm2, %v945_v38, 0 }
 0x16a   : > { %2341 = vmatprep.subr.bf16.mxu0 %v2623_v3 }
 0x16c   : > { %2326 = vmatmul.mubr.msk.bf16.vlgmr.msra.gmra.mxu1 %vm700_vm2, %v2835_v59 }
 0x16d   : > { %2336 = vmatpush3.bf16.xpose.msra.mxu1 %v950_v39  ;;  %2337 = vmatprep.mubr.msk.bf16.mxu1 %vm2624_vm1, %v2623_v3 }
 0x16e   : > { %2347 = vmatprep.subr.bf16.mxu1 %v2623_v3 }
 0x16f   : > { %v994_v40 = vpop.permute.xlu0 %993 }
 0x170   : > { %v1043_v41 = vpop.permute.xlu1 %1042  ;;  %v999_v42 = vsel %vm700_vm2, %v994_v40, 0  ;;  %2332 = vmatmul.mubr.msk.bf16.vlgmr.msra.gmra.mxu0 %vm700_vm2, %v2847_v7 }
 0x171   : > { %2342 = vmatpush3.bf16.xpose.msra.mxu0 %v999_v42  ;;  %2343 = vmatprep.mubr.msk.bf16.mxu0 %vm2624_vm1, %v2623_v3  ;;  %v1048_v43 = vsel %vm700_vm2, %v1043_v41, 0 }
 0x172   : > { %2353 = vmatprep.subr.bf16.mxu0 %v2623_v3 }
 0x174   : > { %2338 = vmatmul.mubr.msk.bf16.vlgmr.msra.gmra.mxu1 %vm700_vm2, %v2849_v9  ;;  %v1203_v44 = vpop.permute.xlu1 %1202 }
 0x175   : > { %2348 = vmatpush3.bf16.xpose.msra.mxu1 %v1048_v43  ;;  %2349 = vmatprep.mubr.msk.bf16.mxu1 %vm2624_vm1, %v2623_v3  ;;  %v1209_v46 = vsel %vm1207_vm3, %v1203_v44, 0 }
 0x176   : > { %2359 = vmatprep.subr.bf16.mxu1 %v2623_v3 }
 0x178   : > { %2344 = vmatmul.mubr.msk.bf16.vlgmr.msra.gmra.mxu0 %vm700_vm2, %v2861_v21 }
 0x179   : > { %2354 = vmatpush3.bf16.msra.mxu0 %v1209_v46  ;;  %2355 = vmatprep.mubr.msk.bf16.mxu0 %vm2624_vm1, %v2623_v3 }
 0x17a   : > { %2365 = vmatprep.subr.bf16.mxu0 %v2623_v3 }
 0x17c   : > { %2350 = vmatmul.mubr.msk.bf16.vlgmr.msra.gmra.mxu1 %vm700_vm2, %v2863_v23 }
 0x17d   : > { %2361 = vmatprep.mubr.msk.bf16.mxu1 %vm2624_vm1, %v2623_v3 }
 0x220   : > { %v741_v47 = vpop.f32.mrf.mxu0 }
 0x221   : > { %v1091_v48 = vsel %vm1090_vm4, %v741_v47, -inf }
 0x222   : > { %1092 = vmax.xlane.f32.xlu0 %v1091_v48  ;;  %v2309_v49 = vpop.f32.mrf.mxu0 }
 0x224   : > { %v744_v50 = vpop.f32.mrf.mxu0  ;;  %v790_v51 = vpop.f32.mrf.mxu1 }
 0x225   : > { %v1094_v52 = vsel %vm1090_vm4, %v790_v51, -inf }
 0x226   : > { %v2315_v53 = vpop.f32.mrf.mxu1  ;;  %1095 = vmax.xlane.f32.xlu1 %v1094_v52  ;;  %v2310_v54 = vpop.f32.mrf.mxu0 }
 0x228   : > { %v793_v55 = vpop.f32.mrf.mxu1  ;;  %v839_v57 = vpop.f32.mrf.mxu0 }
 0x229   : > { %v1097_v58 = vsel %vm1090_vm4, %v839_v57, -inf }
 0x22a   : > { %v2316_v60 = vpop.f32.mrf.mxu1  ;;  %1098 = vmax.xlane.f32.xlu0 %v1097_v58  ;;  %v2321_v61 = vpop.f32.mrf.mxu0 }
 0x22c   : > { %v842_v62 = vpop.f32.mrf.mxu0  ;;  %v888_v63 = vpop.f32.mrf.mxu1 }
 0x22d   : > { %v1100_v0 = vsel %vm1090_vm4, %v888_v63, -inf }
 0x22e   : > { %v2327_v1 = vpop.f32.mrf.mxu1  ;;  %1101 = vmax.xlane.f32.xlu0 %v1100_v0  ;;  %v2322_v2 = vpop.f32.mrf.mxu0 }
 0x230   : > { %v891_v4 = vpop.f32.mrf.mxu1  ;;  %v2925_v5 = vpop.f32.mrf.mxu0 }
 0x231   : > { %v1103_v6 = vsel %vm1090_vm4, %v2925_v5, -inf }
 0x232   : > { %v2328_v8 = vpop.f32.mrf.mxu1  ;;  %1104 = vmax.xlane.f32.xlu1 %v1103_v6  ;;  %v2333_v10 = vpop.f32.mrf.mxu0 }
 0x234   : > { %v940_v11 = vpop.f32.mrf.mxu0  ;;  %v2929_v12 = vpop.f32.mrf.mxu1 }
 0x235   : > { %v1106_v13 = vsel %vm1090_vm4, %v2929_v12, -inf }
 0x236   : > { %v2339_v14 = vpop.f32.mrf.mxu1  ;;  %1107 = vmax.xlane.f32.xlu0 %v1106_v13  ;;  %v2334_v15 = vpop.f32.mrf.mxu0 }
 0x238   : > { %v989_v16 = vpop.f32.mrf.mxu1  ;;  %v1035_v17 = vpop.f32.mrf.mxu0 }
 0x239   : > { %v1109_v18 = vsel %vm1090_vm4, %v1035_v17, -inf }
 0x23a   : > { %v2340_v19 = vpop.f32.mrf.mxu1  ;;  %1110 = vmax.xlane.f32.xlu1 %v1109_v18  ;;  %v2345_v20 = vpop.f32.mrf.mxu0 }
 0x23c   : > { %v1038_v22 = vpop.f32.mrf.mxu0  ;;  %v1084_v24 = vpop.f32.mrf.mxu1 }
 0x23d   : > { %v1112_v25 = vsel %vm1090_vm4, %v1084_v24, -inf }
 0x23e   : > { %v2351_v26 = vpop.f32.mrf.mxu1  ;;  %1113 = vmax.xlane.f32.xlu0 %v1112_v25  ;;  %v2346_v27 = vpop.f32.mrf.mxu0 }
 0x240   : > { %v1087_v28 = vpop.f32.mrf.mxu1 }
 0x242   : > { %v2352_v29 = vpop.f32.mrf.mxu1 }
 0x24b   : > { %1299 = vrot.lane.b32.xlu1 %v2833_v56, %s2626_s18 }
 0x24f   : > { %1347 = vrot.lane.b32.xlu1 %v2835_v59, %s2626_s18 }
 0x254   : > { %1251 = vrot.lane.b32.xlu0 %v2821_v45, %s2626_s18 }
 0x2ab   : > { %v1093_v30 = vpop.xlane.xlu0 %1092 }
 0x2ac   : > { %v1115_v31 = vsub.f32 %v741_v47, %v1093_v30 }
 0x2ae   : > { %v1123_v32 = vmul.f32 1.442695, %v1115_v31 }
 0x2af   : > { %v1096_v33 = vpop.xlane.xlu1 %1095 }
 0x2b0   : > { %2499 = vpow2.f32 %v1123_v32  ;;  %v1116_v34 = vsub.f32 %v790_v51, %v1096_v33 }
 0x2b2   : > { %v1125_v35 = vmul.f32 1.442695, %v1116_v34 }
 0x2b3   : > { %v1099_v36 = vpop.xlane.xlu0 %1098 }
 0x2b4   : > { %2501 = vpow2.f32 %v1125_v35  ;;  %v1117_v37 = vsub.f32 %v839_v57, %v1099_v36 }
 0x2b6   : > { %v1127_v38 = vmul.f32 1.442695, %v1117_v37 }
 0x2b7   : > { %v1102_v39 = vpop.xlane.xlu0 %1101 }
 0x2b8   : > { %2503 = vpow2.f32 %v1127_v38  ;;  %v1118_v56 = vsub.f32 %v888_v63, %v1102_v39 }
 0x2ba   : > { %v1129_v40 = vmul.f32 1.442695, %v1118_v56 }
 0x2bb   : > { %v1105_v52 = vpop.xlane.xlu1 %1104 }
 0x2bc   : > { %2505 = vpow2.f32 %v1129_v40  ;;  %v1119_v53 = vsub.f32 %v2925_v5, %v1105_v52 }
 0x2bd   : > { %v2500_v59 = vpop.eup %2499 }
 0x2be   : > { %v1139_v41 = vsel %vm1090_vm4, %v2500_v59, 0.0  ;;  %v1131_v57 = vmul.f32 1.442695, %v1119_v53 }
 0x2bf   : > { %1140 = vadd.xlane.f32.xlu1 %v1139_v41  ;;  %v1108_v43 = vpop.xlane.xlu0 %1107 }
 0x2c0   : > { %v1120_v55 = vsub.f32 %v2929_v12, %v1108_v43  ;;  %2507 = vpow2.f32 %v1131_v57 }
 0x2c1   : > { %v2942_v45 = vpop.eup %2501 }
 0x2c2   : > { %v1142_v42 = vsel %vm1090_vm4, %v2942_v45, 0.0  ;;  %v1133_v60 = vmul.f32 1.442695, %v1120_v55 }
 0x2c3   : > { %1143 = vadd.xlane.f32.xlu0 %v1142_v42  ;;  %v1111_v54 = vpop.xlane.xlu1 %1110  ;;  %v1595_v42 = vld [vmem:[%s3193_s3] sm:$0xf] }
 0x2c4   : > { %v1121_v58 = vsub.f32 %v1035_v17, %v1111_v54  ;;  %2509 = vpow2.f32 %v1133_v60 }
 0x2c5   : > { %v2946_v44 = vpop.eup %2503 }
 0x2c6   : > { %v1145_v46 = vsel %vm1090_vm4, %v2946_v44, 0.0  ;;  %v1135_v61 = vmul.f32 1.442695, %v1121_v58  ;;  %v1597_v58 = vld [vmem:[%s3193_s3 + $0x8] sm:$0xf] }
 0x2c7   : > { %v1114_v47 = vpop.xlane.xlu0 %1113  ;;  %1146 = vadd.xlane.f32.xlu1 %v1145_v46  ;;  %v1300_v8 = vpop.permute.xlu1 %1299  ;;  %v1605_v60 = vpack.c.bf16 %v1597_v58, %v1597_v58 }
 0x2c8   : > { %v1122_v62 = vsub.f32 %v1084_v24, %v1114_v47  ;;  %2511 = vpow2.f32 %v1135_v61  ;;  %v1305_v17 = vsel %vm1207_vm3, %v1300_v8, 0  ;;  %v1603_v47 = vpack.c.bf16 %v1595_v42, %v1595_v42  ;;  %v1598_v61 = vld [vmem:[%s3193_s3 + $0xc] sm:$0xf] }
 0x2c9   : > { %v2950_v48 = vpop.eup %2505 }
 0x2ca   : > { %v1148_v49 = vsel %vm1090_vm4, %v2950_v48, 0.0  ;;  %v1137_v63 = vmul.f32 1.442695, %v1122_v62  ;;  %v1616_v53 = vsel %vm1614_vm5, %v1603_v47, 0 }
 0x2cb   : > { %1149 = vadd.xlane.f32.xlu0 %v1148_v49  ;;  %v1252_v50 = vpop.permute.xlu0 %1251  ;;  %v1348_v10 = vpop.permute.xlu1 %1347 }
 0x2cc   : > { %v1257_v51 = vsel %vm1207_vm3, %v1252_v50, 0  ;;  %2513 = vpow2.f32 %v1137_v63  ;;  %v1353_v22 = vsel %vm1207_vm3, %v1348_v10, 0 }
 0x2cd   : > { %2360 = vmatpush3.bf16.msra.mxu1 %v1257_v51  ;;  %v1596_v51 = vld [vmem:[%s3193_s3 + $0x4] sm:$0xf] }
 0x2ce   : > { %2371 = vmatprep.subr.bf16.mxu1 %v2623_v3  ;;  %v1604_v54 = vpack.c.bf16 %v1596_v51, %v1596_v51 }
 0x2d0   : > { %v1662_v57 = vsel %vm1614_vm5, %v1604_v54, 0 }
 0x2d8   : > { %1443 = vrot.lane.b32.xlu1 %v2849_v9, %s2626_s18  ;;  %v2962_v9 = vpop.eup %2507 }
 0x2d9   : > { %v2964_v0 = vpop.eup %2509 }
 0x2da   : > { %v2968_v1 = vpop.eup %2511  ;;  %v1154_v2 = vsel %vm1090_vm4, %v2964_v0, 0.0 }
 0x2db   : > { %v1157_v4 = vsel %vm1090_vm4, %v2968_v1, 0.0  ;;  %v2974_v5 = vpop.eup %2513 }
 0x2dc   : > { %v1160_v6 = vsel %vm1090_vm4, %v2974_v5, 0.0 }
 0x2e1   : > { %1395 = vrot.lane.b32.xlu0 %v2847_v7, %s2626_s18  ;;  %v1151_v7 = vsel %vm1090_vm4, %v2962_v9, 0.0 }
 0x2fc   : > { %1152 = vadd.xlane.f32.xlu1 %v1151_v7 }
 0x300   : > { %1155 = vadd.xlane.f32.xlu0 %v1154_v2  ;;  %1158 = vadd.xlane.f32.xlu1 %v1157_v4 }
 0x304   : > { %1161 = vadd.xlane.f32.xlu0 %v1160_v6 }
 0x311   : > { %1539 = vrot.lane.b32.xlu1 %v2863_v23, %s2626_s18 }
 0x31a   : > { %1491 = vrot.lane.b32.xlu0 %v2861_v21, %s2626_s18  ;;  %s2535_s18 = sshll.u32 %s2627_s17, 4  ;;  %s2536_s18 = int_to_ptr.vmem [resolvable:$false] %s2535_s18 }
 0x31b   : > { %p2538_p0 = scmp.lt.s32.totalorder %s3107_s10, %s2536_s18 }
 0x348   : > { %v1141_v11 = vpop.xlane.xlu1 %1140 }
 0x349   : > { %2515 = vrcp.f32 %v1141_v11 }
 0x34c   : > { %v1144_v12 = vpop.xlane.xlu0 %1143 }
 0x34d   : > { %2517 = vrcp.f32 %v1144_v12  ;;  %v1600_v12 = vld [vmem:[%s3193_s3 + $0x14] sm:$0xf] }
 0x350   : > { %v1147_v13 = vpop.xlane.xlu1 %1146 }
 0x351   : > { %2519 = vrcp.f32 %v1147_v13 }
 0x354   : > { %v1150_v14 = vpop.xlane.xlu0 %1149  ;;  %v1444_v30 = vpop.permute.xlu1 %1443 }
 0x355   : > { %2521 = vrcp.f32 %v1150_v14  ;;  %v1449_v32 = vsel %vm1207_vm3, %v1444_v30, 0  ;;  %v1602_v30 = vld [vmem:[%s3193_s3 + $0x1c] sm:$0xf] }
 0x356   : > { %v2516_v15 = vpop.eup %2515 }
 0x357   : > { %v1164_v16 = vmul.f32 %v2516_v15, %v2500_v59 }
 0x358   : > { %v1396_v25 = vpop.permute.xlu0 %1395 }
 0x359   : > { %v1194_v23 = vpack.c.bf16 %v1164_v16, %v1164_v16  ;;  %1179 = vst.msk [vmem:[%s2986_s26] sm:$0xff] %vm1090_vm4, %v1164_v16  ;;  %v1401_v28 = vsel %vm1207_vm3, %v1396_v25, 0 }
 0x35a   : > { %v2518_v21 = vpop.eup %2517 }
 0x35b   : > { %2356 = vmatmul.mubr.msk.bf16.vlgmr.msra.gmra.mxu0 %vm1090_vm4, %v1194_v23  ;;  %v1166_v18 = vmul.f32 %v2518_v21, %v2942_v45  ;;  %v1608_v23 = vpack.c.bf16 %v1600_v12, %v1600_v12 }
 0x35c   : > { %2366 = vmatpush3.bf16.msra.mxu0 %v1305_v17  ;;  %2367 = vmatprep.mubr.msk.bf16.mxu0 %vm2624_vm1, %v2623_v3 }
 0x35d   : > { %v1195_v19 = vpack.c.bf16 %v1166_v18, %v1166_v18  ;;  %2377 = vmatprep.subr.bf16.mxu0 %v2623_v3  ;;  %2161 = vst.msk [vmem:[%s2986_s26 + $0x8] sm:$0xff] %vm1090_vm4, %v1166_v18 }
 0x35e   : > { %v2520_v20 = vpop.eup %2519 }
 0x35f   : > { %2362 = vmatmul.mubr.msk.bf16.vlgmr.msra.gmra.mxu1 %vm1090_vm4, %v1195_v19  ;;  %v1168_v24 = vmul.f32 %v2520_v20, %v2946_v44 }
 0x360   : > { %2372 = vmatpush3.bf16.msra.mxu1 %v1353_v22  ;;  %2373 = vmatprep.mubr.msk.bf16.mxu1 %vm2624_vm1, %v2623_v3  ;;  %v1846_v22 = vsel %vm1614_vm5, %v1608_v23, 0 }
 0x361   : > { %v1196_v26 = vpack.c.bf16 %v1168_v24, %v1168_v24  ;;  %2383 = vmatprep.subr.bf16.mxu1 %v2623_v3  ;;  %2162 = vst.msk [vmem:[%s2986_s26 + $0x10] sm:$0xff] %vm1090_vm4, %v1168_v24 }
 0x362   : > { %v2522_v27 = vpop.eup %2521 }
 0x363   : > { %2368 = vmatmul.mubr.msk.bf16.vlgmr.msra.gmra.mxu0 %vm1090_vm4, %v1196_v26  ;;  %v1170_v29 = vmul.f32 %v2522_v27, %v2950_v48 }
 0x364   : > { %2378 = vmatpush3.bf16.msra.mxu0 %v1401_v28  ;;  %2379 = vmatprep.mubr.msk.bf16.mxu0 %vm2624_vm1, %v2623_v3  ;;  %v1601_v28 = vld [vmem:[%s3193_s3 + $0x18] sm:$0xf] }
 0x365   : > { %v1197_v31 = vpack.c.bf16 %v1170_v29, %v1170_v29  ;;  %2389 = vmatprep.subr.bf16.mxu0 %v2623_v3  ;;  %2163 = vst.msk [vmem:[%s2986_s26 + $0x18] sm:$0xff] %vm1090_vm4, %v1170_v29  ;;  %v1609_v29 = vpack.c.bf16 %v1601_v28, %v1601_v28 }
 0x367   : > { %2374 = vmatmul.mubr.msk.bf16.vlgmr.msra.gmra.mxu1 %vm1090_vm4, %v1197_v31 }
 0x368   : > { %2384 = vmatpush3.bf16.msra.mxu1 %v1449_v32  ;;  %2385 = vmatprep.mubr.msk.bf16.mxu1 %vm2624_vm1, %v2623_v3 }
 0x369   : > { %2395 = vmatprep.subr.bf16.mxu1 %v2623_v3 }
 0x385   : > { %v1153_v33 = vpop.xlane.xlu1 %1152 }
 0x386   : > { %2523 = vrcp.f32 %v1153_v33  ;;  %v1892_v33 = vsel %vm1614_vm5, %v1609_v29, 0 }
 0x389   : > { %v1156_v34 = vpop.xlane.xlu0 %1155  ;;  %v1159_v35 = vpop.xlane.xlu1 %1158 }
 0x38a   : > { %2525 = vrcp.f32 %v1156_v34  ;;  %v1610_v34 = vpack.c.bf16 %v1602_v30, %v1602_v30 }
 0x38b   : > { %2527 = vrcp.f32 %v1159_v35 }
 0x38d   : > { %v1162_v36 = vpop.xlane.xlu0 %1161  ;;  %v1540_v43 = vpop.permute.xlu1 %1539 }
 0x38e   : > { %2529 = vrcp.f32 %v1162_v36  ;;  %v1545_v49 = vsel %vm1207_vm3, %v1540_v43, 0 }
 0x391   : > { %v1492_v39 = vpop.permute.xlu0 %1491 }
 0x392   : > { %v1497_v41 = vsel %vm1207_vm3, %v1492_v39, 0  ;;  %v1938_v39 = vsel %vm1614_vm5, %v1610_v34, 0 }
 0x393   : > { %v2524_v37 = vpop.eup %2523 }
 0x394   : > { %v1172_v38 = vmul.f32 %v2524_v37, %v2962_v9  ;;  %v1708_v9 = vsel %vm1614_vm5, %v1605_v60, 0 }
 0x396   : > { %v1198_v56 = vpack.c.bf16 %v1172_v38, %v1172_v38  ;;  %2164 = vst.msk [vmem:[%s2986_s26 + $0x20] sm:$0xff] %vm1090_vm4, %v1172_v38 }
 0x397   : > { %v2526_v40 = vpop.eup %2525 }
 0x398   : > { %v2528_v59 = vpop.eup %2527  ;;  %2380 = vmatmul.mubr.msk.bf16.vlgmr.msra.gmra.mxu0 %vm1090_vm4, %v1198_v56  ;;  %v1174_v45 = vmul.f32 %v2526_v40, %v2964_v0  ;;  %v1606_v0 = vpack.c.bf16 %v1598_v61, %v1598_v61 }
 0x399   : > { %2390 = vmatpush3.bf16.msra.mxu0 %v1497_v41  ;;  %2391 = vmatprep.mubr.msk.bf16.mxu0 %vm2624_vm1, %v2623_v3  ;;  %v1176_v44 = vmul.f32 %v2528_v59, %v2968_v1  ;;  %v1599_v1 = vld [vmem:[%s3193_s3 + $0x10] sm:$0xf] }
 0x39a   : > { %v1199_v46 = vpack.c.bf16 %v1174_v45, %v1174_v45  ;;  %2401 = vmatprep.subr.bf16.mxu0 %v2623_v3  ;;  %2165 = vst.msk [vmem:[%s2986_s26 + $0x28] sm:$0xff] %vm1090_vm4, %v1174_v45  ;;  %v1754_v6 = vsel %vm1614_vm5, %v1606_v0, 0  ;;  %v1607_v8 = vpack.c.bf16 %v1599_v1, %v1599_v1 }
 0x39b   : > { %v2530_v48 = vpop.eup %2529  ;;  %2166 = vst.msk [vmem:[%s2986_s26 + $0x30] sm:$0xff] %vm1090_vm4, %v1176_v44  ;;  %v1200_v52 = vpack.c.bf16 %v1176_v44, %v1176_v44 }
 0x39c   : > { %2386 = vmatmul.mubr.msk.bf16.vlgmr.msra.gmra.mxu1 %vm1090_vm4, %v1199_v46  ;;  %v1178_v50 = vmul.f32 %v2530_v48, %v2974_v5  ;;  %v1800_v16 = vsel %vm1614_vm5, %v1607_v8, 0 }
 0x39d   : > { %2396 = vmatpush3.bf16.msra.mxu1 %v1545_v49  ;;  %2397 = vmatprep.mubr.msk.bf16.mxu1 %vm2624_vm1, %v2623_v3 }
 0x39e   : > { %2407 = vmatprep.subr.bf16.mxu1 %v2623_v3  ;;  %2167 = vst.msk [vmem:[%s2986_s26 + $0x38] sm:$0xff] %vm1090_vm4, %v1178_v50  ;;  %v1201_v55 = vpack.c.bf16 %v1178_v50, %v1178_v50  ;;  %s2537_s26 = scalar_lea.vmem %s2536_s18, 2048 }
 0x39f   : > { %p2539_p1 = scmp.lt.s32.totalorder %s2537_s26, %s2531_s16 }
 0x3a0   : > { %2392 = vmatmul.mubr.msk.bf16.vlgmr.msra.gmra.mxu0 %vm1090_vm4, %v1200_v52 }
 0x3a1   : > { %2402 = vmatpush3.bf16.msra.mxu0 %v1616_v53  ;;  %2403 = vmatprep.mubr.msk.bf16.mxu0 %vm2624_vm1, %v2623_v3  ;;  %p2540_p2 = por %p2539_p1, %p2538_p0 }
 0x3a2   : > { %2413 = vmatprep.subr.bf16.mxu0 %v2623_v3 }
 0x3a3   : > { %p2541_p3 = pnand %p2540_p2, %p2534_p13 }
 0x3a4   : > { %2398 = vmatmul.mubr.msk.bf16.vlgmr.msra.gmra.mxu1 %vm1090_vm4, %v1201_v55 }
 0x3a5   : > { %2408 = vmatpush3.bf16.msra.mxu1 %v1662_v57  ;;  %2409 = vmatprep.mubr.msk.bf16.mxu1 %vm2624_vm1, %v2623_v3 }
 0x3a6   : > { %2419 = vmatprep.subr.bf16.mxu1 %v2623_v3 }
 0x41b   : > { %v1245_v62 = vpop.f32.mrf.mxu0 }
 0x41c   : > { %v1587_v63 = vpack.c.bf16 %v1245_v62, %v1245_v62 }
 0x41d   : > { %v2357_v7 = vpop.f32.mrf.mxu0 }
 0x41e   : > { %2404 = vmatmul.mubr.msk.bf16.vlgmr.msra.gmra.mxu0 %vm700_vm2, %v1587_v63 }
 0x41f   : > { %v1248_v2 = vpop.f32.mrf.mxu0  ;;  %v1293_v4 = vpop.f32.mrf.mxu1  ;;  %2414 = vmatpush3.bf16.msra.mxu0 %v1708_v9  ;;  %2415 = vmatprep.mubr.msk.bf16.mxu0 %vm2624_vm1, %v2623_v3 }
 0x420   : > { %v1588_v5 = vpack.c.bf16 %v1293_v4, %v1293_v4  ;;  %2425 = vmatprep.subr.bf16.mxu0 %v2623_v3 }
 0x421   : > { %v2358_v10 = vpop.f32.mrf.mxu0  ;;  %v2363_v11 = vpop.f32.mrf.mxu1 }
 0x422   : > { %2410 = vmatmul.mubr.msk.bf16.vlgmr.msra.gmra.mxu1 %vm700_vm2, %v1588_v5 }
 0x423   : > { %v1296_v13 = vpop.f32.mrf.mxu1  ;;  %v1341_v14 = vpop.f32.mrf.mxu0  ;;  %2420 = vmatpush3.bf16.msra.mxu1 %v1754_v6  ;;  %2421 = vmatprep.mubr.msk.bf16.mxu1 %vm2624_vm1, %v2623_v3 }
 0x424   : > { %v1589_v15 = vpack.c.bf16 %v1341_v14, %v1341_v14  ;;  %2431 = vmatprep.subr.bf16.mxu1 %v2623_v3 }
 0x425   : > { %v2364_v21 = vpop.f32.mrf.mxu1  ;;  %v2369_v17 = vpop.f32.mrf.mxu0 }
 0x426   : > { %2416 = vmatmul.mubr.msk.bf16.vlgmr.msra.gmra.mxu0 %vm700_vm2, %v1589_v15 }
 0x427   : > { %v1344_v18 = vpop.f32.mrf.mxu0  ;;  %v1389_v19 = vpop.f32.mrf.mxu1  ;;  %2426 = vmatpush3.bf16.msra.mxu0 %v1800_v16  ;;  %2427 = vmatprep.mubr.msk.bf16.mxu0 %vm2624_vm1, %v2623_v3 }
 0x428   : > { %v1590_v20 = vpack.c.bf16 %v1389_v19, %v1389_v19  ;;  %2437 = vmatprep.subr.bf16.mxu0 %v2623_v3 }
 0x429   : > { %v2370_v24 = vpop.f32.mrf.mxu0  ;;  %v2375_v25 = vpop.f32.mrf.mxu1 }
 0x42a   : > { %2422 = vmatmul.mubr.msk.bf16.vlgmr.msra.gmra.mxu1 %vm700_vm2, %v1590_v20 }
 0x42b   : > { %v1392_v26 = vpop.f32.mrf.mxu1  ;;  %2432 = vmatpush3.bf16.msra.mxu1 %v1846_v22  ;;  %2433 = vmatprep.mubr.msk.bf16.mxu1 %vm2624_vm1, %v2623_v3 }
 0x42c   : > { %2443 = vmatprep.subr.bf16.mxu1 %v2623_v3 }
 0x42d   : > { %v2376_v27 = vpop.f32.mrf.mxu1 }
 0x458   : > { %v1437_v31 = vpop.f32.mrf.mxu0 }
 0x459   : > { %v1591_v32 = vpack.c.bf16 %v1437_v31, %v1437_v31 }
 0x45a   : > { %v2381_v35 = vpop.f32.mrf.mxu0 }
 0x45b   : > { %2428 = vmatmul.mubr.msk.bf16.vlgmr.msra.gmra.mxu0 %vm700_vm2, %v1591_v32 }
 0x45c   : > { %v1440_v36 = vpop.f32.mrf.mxu0  ;;  %v1485_v37 = vpop.f32.mrf.mxu1  ;;  %2438 = vmatpush3.bf16.msra.mxu0 %v1892_v33  ;;  %2439 = vmatprep.mubr.msk.bf16.mxu0 %vm2624_vm1, %v2623_v3 }
 0x45d   : > { %v1592_v38 = vpack.c.bf16 %v1485_v37, %v1485_v37 }
 0x45e   : > { %v2382_v56 = vpop.f32.mrf.mxu0  ;;  %v2387_v40 = vpop.f32.mrf.mxu1 }
 0x45f   : > { %2434 = vmatmul.mubr.msk.bf16.vlgmr.msra.gmra.mxu1 %vm700_vm2, %v1592_v38 }
 0x460   : > { %v1488_v59 = vpop.f32.mrf.mxu1  ;;  %v1533_v41 = vpop.f32.mrf.mxu0  ;;  %2444 = vmatpush3.bf16.msra.mxu1 %v1938_v39  ;;  %2445 = vmatprep.mubr.msk.bf16.mxu1 %vm2624_vm1, %v2623_v3 }
 0x461   : > { %v1593_v45 = vpack.c.bf16 %v1533_v41, %v1533_v41 }
 0x462   : > { %v2388_v42 = vpop.f32.mrf.mxu1  ;;  %v2393_v43 = vpop.f32.mrf.mxu0 }
 0x463   : > { %2440 = vmatmul.mubr.msk.bf16.vlgmr.msra.gmra.mxu0 %vm700_vm2, %v1593_v45 }
 0x464   : > { %v1536_v44 = vpop.f32.mrf.mxu0  ;;  %v1581_v46 = vpop.f32.mrf.mxu1 }
 0x465   : > { %v1594_v47 = vpack.c.bf16 %v1581_v46, %v1581_v46 }
 0x466   : > { %v2394_v48 = vpop.f32.mrf.mxu0  ;;  %v2399_v49 = vpop.f32.mrf.mxu1 }
 0x467   : > { %2446 = vmatmul.mubr.msk.bf16.vlgmr.msra.gmra.mxu1 %vm700_vm2, %v1594_v47 }
 0x468   : > { %v1584_v50 = vpop.f32.mrf.mxu1 }
 0x46a   : > { %v2400_v51 = vpop.f32.mrf.mxu1 }
 0x46b   : > { %2544 = shalt.err (!%p2541_p3)
}
 0x46c   : > { %s2545_s20 = scalar_lea.hbm %s3112_s14, 1024  ;;  %s2549_s9 = scalar_lea.hbm %s3196_s6, 2048 }
 0x46d   : > { %p2546_p4 = scmp.ne.s32.totalorder %s3112_s14, %s2545_s20  ;;  %p2550_p9 = scmp.lt.s32.totalorder %s3112_s14, %s3196_s6 }
 0x46e   : > { %p2551_p10 = scmp.lt.s32.totalorder %s2549_s9, %s2545_s20 }
 0x46f   : > { %p2547_p7 = pnand %p2546_p4, %p2704_p5 }
 0x470   : > { %p2552_p11 = por %p2551_p10, %p2550_p9 }
 0x471   : > { %p2548_p8 = pneg %p2547_p7 }
 0x473   : > { %p2553_p12 = pnand %p2552_p11, %p2548_p8 }
 0x475   : > { %2556 = shalt.err (!%p2553_p12)
}
 0x476   : > { %s2628_s13 = smov 128   ;;  %s2629_s16 = smov 8   ;;  %v2184_v32 = vld [vmem:[%s3194_s4] ss:$0 sm:$0xff] }
 0x477   : > { %2450 = dma.vmem_to_hbm [thread:$0]  (%p2704_p5), %s3107_s10, 1024, %s3112_s14, %s2010_s15, %s2628_s13, %s2628_s13, %s2629_s16  }
 0x478   : > { %s2134_s10 = sshll.u32 %s2983_s19, 3  ;;  %s2187_s17 = sshll.u32 %s2687_s25, 7 }
 0x479   : > { %s246_s18 = scalar_lea.vmem [#allocation2], %s2134_s10  ;;  %s3153_s29 = scalar_lea.hbm %s3195_s5, %s2187_s17 }
 0x47a   : > { %s2023_s26 = sshll.u32 %s246_s18, 4  ;;  %s2005_s9 = scalar_lea.sflag [#allocation3], %s2983_s19  ;;  %s2024_s26 = int_to_ptr.vmem [resolvable:$true] %s2023_s26 }
 0x47b   : > { %s2557_s11 = scalar_lea.vmem %s2024_s26, 128  ;;  %s2630_s25 = smov [#allocation2]  }
 0x47c   : > { %p2558_p13 = scmp.ne.s32.totalorder %s2024_s26, %s2557_s11  ;;  %s2561_s12 = sshll.u32 %s2630_s25, 4  ;;  %s2562_s12 = int_to_ptr.vmem [resolvable:$false] %s2561_s12 }
 0x47d   : > { %s2563_s13 = scalar_lea.vmem %s2562_s12, 256  ;;  %p2564_p2 = scmp.lt.s32.totalorder %s2024_s26, %s2562_s12 }
 0x47e   : > { %p2559_p0 = pnand %p2558_p13, %p2704_p5  ;;  %p2565_p3 = scmp.lt.s32.totalorder %s2563_s13, %s2557_s11 }
 0x480   : > { %p2560_p1 = pneg %p2559_p0  ;;  %p2566_p4 = por %p2565_p3, %p2564_p2 }
 0x482   : > { %p2567_p7 = pnand %p2566_p4, %p2560_p1 }
 0x4de   : > { %v1652_v3 = vpop.f32.mrf.mxu0 }
 0x4df   : > { %v1980_v6 = vsel %vm341_vm0, %v1652_v3, 0.0 }
 0x4e0   : > { %v2405_v52 = vpop.f32.mrf.mxu0 }
 0x4e2   : > { %v1655_v53 = vpop.f32.mrf.mxu0  ;;  %v1698_v54 = vpop.f32.mrf.mxu1 }
 0x4e3   : > { %v1981_v4 = vsel %vm341_vm0, %v1698_v54, 0.0 }
 0x4e4   : > { %v2406_v55 = vpop.f32.mrf.mxu0  ;;  %v2411_v57 = vpop.f32.mrf.mxu1  ;;  %v1982_v10 = vadd.f32 %v1981_v4, %v1980_v6 }
 0x4e6   : > { %v1701_v58 = vpop.f32.mrf.mxu1  ;;  %v1744_v60 = vpop.f32.mrf.mxu0 }
 0x4e7   : > { %v1983_v8 = vsel %vm341_vm0, %v1744_v60, 0.0 }
 0x4e8   : > { %v2412_v61 = vpop.f32.mrf.mxu1  ;;  %v2417_v62 = vpop.f32.mrf.mxu0  ;;  %v1984_v13 = vadd.f32 %v1983_v8, %v1982_v10 }
 0x4ea   : > { %v1747_v63 = vpop.f32.mrf.mxu0  ;;  %v1790_v9 = vpop.f32.mrf.mxu1 }
 0x4eb   : > { %v1985_v12 = vsel %vm341_vm0, %v1790_v9, 0.0 }
 0x4ec   : > { %v2418_v0 = vpop.f32.mrf.mxu0  ;;  %v2423_v7 = vpop.f32.mrf.mxu1  ;;  %v1986_v23 = vadd.f32 %v1985_v12, %v1984_v13 }
 0x4ee   : > { %v1793_v1 = vpop.f32.mrf.mxu1 }
 0x4f0   : > { %v2424_v2 = vpop.f32.mrf.mxu1 }
 0x51b   : > { %v1836_v5 = vpop.f32.mrf.mxu0 }
 0x51c   : > { %v1987_v16 = vsel %vm341_vm0, %v1836_v5, 0.0 }
 0x51d   : > { %v2429_v11 = vpop.f32.mrf.mxu0  ;;  %v1988_v19 = vadd.f32 %v1987_v16, %v1986_v23 }
 0x51f   : > { %v1839_v14 = vpop.f32.mrf.mxu0  ;;  %v1882_v15 = vpop.f32.mrf.mxu1 }
 0x520   : > { %v1989_v18 = vsel %vm341_vm0, %v1882_v15, 0.0 }
 0x521   : > { %v2430_v21 = vpop.f32.mrf.mxu0  ;;  %v2435_v17 = vpop.f32.mrf.mxu1  ;;  %v1990_v25 = vadd.f32 %v1989_v18, %v1988_v19 }
 0x523   : > { %v1885_v20 = vpop.f32.mrf.mxu1  ;;  %v1928_v22 = vpop.f32.mrf.mxu0 }
 0x524   : > { %v1991_v24 = vsel %vm341_vm0, %v1928_v22, 0.0 }
 0x525   : > { %v2436_v26 = vpop.f32.mrf.mxu1  ;;  %v2441_v27 = vpop.f32.mrf.mxu0  ;;  %v1992_v28 = vadd.f32 %v1991_v24, %v1990_v25 }
 0x527   : > { %v1931_v29 = vpop.f32.mrf.mxu0  ;;  %v1974_v30 = vpop.f32.mrf.mxu1 }
 0x528   : > { %v1993_v31 = vsel %vm341_vm0, %v1974_v30, 0.0 }
 0x529   : > { %v1994_v33 = vadd.f32 %v1993_v31, %v1992_v28  ;;  %v2442_v34 = vpop.f32.mrf.mxu0  ;;  %v2447_v35 = vpop.f32.mrf.mxu1 }
 0x52b   : > { %v2002_v36 = vadd.f32 %v2184_v32, %v1994_v33  ;;  %v1977_v37 = vpop.f32.mrf.mxu1 }
 0x52d   : > { %v2448_v38 = vpop.f32.mrf.mxu1  ;;  %2003 = vst.msk [vmem:[%s246_s18] sm:$0xff] %vm341_vm0, %v2002_v36 }
 0x52e   : > { %2570 = shalt.err (!%p2567_p7)
}
 0x52f   : > { %s2571_s16 = scalar_lea.hbm %s3153_s29, 128  ;;  %s2575_s14 = scalar_lea.hbm %s3195_s5, 256 }
 0x530   : > { %p2572_p8 = scmp.ne.s32.totalorder %s3153_s29, %s2571_s16  ;;  %p2576_p11 = scmp.lt.s32.totalorder %s3153_s29, %s3195_s5 }
 0x531   : > { %p2577_p12 = scmp.lt.s32.totalorder %s2575_s14, %s2571_s16 }
 0x532   : > { %p2573_p9 = pnand %p2572_p8, %p2704_p5 }
 0x533   : > { %p2578_p13 = por %p2577_p12, %p2576_p11 }
 0x534   : > { %p2574_p10 = pneg %p2573_p9 }
 0x536   : > { %p2579_p0 = pnand %p2578_p13, %p2574_p10 }
 0x538   : > { %2582 = shalt.err (!%p2579_p0)
}
 0x539   : > { %2449 = dma.vmem_to_hbm [thread:$0]  (%p2704_p5), %s2024_s26, 128, %s3153_s29, %s2005_s9  }
 0x53a PF: > { %p2460_p1 = scmp.ge.s32.totalorder %s2621_s24, 2  ;;  %s2051_s18 = sand.u32 1, %s2609_s21  }
 0x53b   : > { %s2052_s20 = scalar_lea.sflag [#allocation3], %s2051_s18 }
 0x53c   : > { %p2454_p2 = pnand %p2460_p1, %p2708_p6 }
 0x53e   : > { %p2455_p3 = pneg %p2454_p2 }
 0x540   : > { %2600 = dma.done.wait (%p2455_p3), %s2052_s20, 128  }
 0x541   : > { %2602 = vsyncadd (%p2455_p3), %s2052_s20, 4294967168  ;;  %s2061_s28 = scalar_lea.sflag [#allocation5], %s2051_s18 }
 0x542   : > { %2604 = dma.done.wait (%p2455_p3), %s2061_s28, 1024  }
 0x543   : > { %2606 = vsyncadd (%p2455_p3), %s2061_s28, 4294966272  ;;  %p20_p5 = scmp.ge.s32.totalorder %s2691_s27, 4   ;;  %s3199_s21 = smov %s2613_s22 }
 0x544   : > { %s3200_s22 = smov %s2617_s23  ;;  %s3201_s23 = smov %s2702_s30 }
 0x545   : > { %s3202_s24 = smov %s2691_s27  ;;  %22 = sbr.rel (!%p20_p5) target bundleno = 5 (0x5), region = 99 }
 0x54a   :  { %2066 = vsyncpa [#allocation3], 1 }
 0x54b   :  { %2068 = vsyncpa [#allocation3 + $0x1], 1 }
 0x54c   :  { %2069 = vsyncpa [#allocation5], 1 }
 0x54d   :  { %2071 = vsyncpa [#allocation5 + $0x1], 1 }

</bundles_post_ra>
